<compile_context>
chip_gen: v5e
topology: v5e:2x2
jax: 0.10.0
libtpu: 0.0.40
codegen_flags: <defaults>
</compile_context>

<pallas_src>
import functools

import jax
import jax.numpy as jnp
from jax.experimental import pallas as pl
from jax.experimental.pallas import tpu as pltpu


def _pfn_kernel(x_ref, w_ref, b_ref, *out_refs,
                tile_n, n_points, last_layer, split_outputs):
    # x_ref: (tile_n * P, Cin)   flat points-major view of the pillar tile
    # w_ref: (Cin, Cout)         Linear weight transposed, BN scale pre-folded
    # b_ref: (1, Cout)           beta - mu * scale (BN eval-mode bias)
    cout = w_ref.shape[1]

    # Linear (+ folded BN scale) on the MXU, then BN bias + ReLU on the VPU.
    y = jnp.dot(x_ref[...], w_ref[...], preferred_element_type=jnp.float32)
    y = jnp.maximum(y + b_ref[...], 0.0)                 # (tile_n*P, Cout)
    y3 = y.reshape(tile_n, n_points, cout)               # (tile_n, P, Cout)
    y_max = jnp.max(y3, axis=1)                          # (tile_n, Cout)

    if last_layer:
        out_refs[0][...] = y_max.astype(out_refs[0].dtype)
    elif split_outputs:
        # Review item #1: do not write the repeated x_max slab to HBM.
        out_refs[0][...] = y3.astype(out_refs[0].dtype)
        out_refs[1][...] = y_max.astype(out_refs[1].dtype)
    else:
        # Module-faithful concatenated output: two direct lane-slice stores,
        # no materialized concat temp.
        o = out_refs[0]
        o[:, :, 0:cout] = y3.astype(o.dtype)
        o[:, :, cout:2 * cout] = jnp.broadcast_to(
            y_max[:, None, :], (tile_n, n_points, cout)).astype(o.dtype)


def _pick_tile(n, tile_n):
    """Pillar-tile size: multiple of 8 when tiled, >= 2 grid steps for megacore."""
    tile_n = int(tile_n)
    if n <= tile_n:
        if n >= 16:
            # Split into (at least) two blocks so dimension_semantics=("parallel",)
            # actually shards across v7x's two TensorCores.
            return max(8, ((n + 1) // 2 + 7) // 8 * 8)
        return n                      # single tiny block == full array dim (legal)
    return max(8, (tile_n // 8) * 8)


def pfn_layer_forward(inputs, weight, gamma, beta, running_mean, running_var, *,
                      eps=0.001, last_layer=False, split_outputs=False,
                      out_dtype=jnp.float32, tile_n=256,
                      vmem_limit_bytes=48 * 1024 * 1024):
    """PFNLayer forward (eval-mode BatchNorm).

    inputs: (N_pillars, N_points, C_in) float32
    weight: (C_out, C_in) as stored by nn.Linear (bias=False)
    gamma/beta/running_mean/running_var: (C_out,) BatchNorm1d parameters.

    Returns:
      non-last layer, split_outputs=False : (N, P, 2*C_out)   (module-faithful)
      non-last layer, split_outputs=True  : ((N, P, C_out), (N, C_out))
                                            module output == concat([x, bcast(x_max)], -1)
      last layer                          : (N, 1, C_out)

    tile_n: pillars per grid step. 256 is safe everywhere (incl. v7x's 64 MiB VMEM);
    on v5e/v6e (128 MiB) tile_n=512 with vmem_limit_bytes≈96 MiB amortizes the
    per-step overhead further for very large N.
    """
    n, p, cin = inputs.shape
    cout = weight.shape[0]
    out_dtype = jnp.dtype(out_dtype)

    # Fold BatchNorm (eval) into the matmul weight + a per-channel bias (plain JAX).
    scale = gamma * jax.lax.rsqrt(running_var + eps)                 # (Cout,)
    w_eff = (weight.T * scale[None, :]).astype(jnp.float32)          # (Cin, Cout)
    bias = (beta - running_mean * scale).reshape(1, cout).astype(jnp.float32)

    # Flat points-major input view (free, row-major contiguous): matmul LHS.
    x2d = inputs.reshape(n * p, cin)

    tile = _pick_tile(n, tile_n)
    grid = (pl.cdiv(n, tile),)        # ragged last block handled by Pallas masking

    in_specs = [
        pl.BlockSpec((tile * p, cin), lambda i: (i, 0)),
        pl.BlockSpec((cin, cout), lambda i: (0, 0)),
        pl.BlockSpec((1, cout), lambda i: (0, 0)),
    ]

    if last_layer:
        out_shape = jax.ShapeDtypeStruct((n, cout), out_dtype)
        out_specs = pl.BlockSpec((tile, cout), lambda i: (i, 0))
        out_elems = n * cout
    elif split_outputs:
        out_shape = (jax.ShapeDtypeStruct((n, p, cout), out_dtype),
                     jax.ShapeDtypeStruct((n, cout), out_dtype))
        out_specs = (pl.BlockSpec((tile, p, cout), lambda i: (i, 0, 0)),
                     pl.BlockSpec((tile, cout), lambda i: (i, 0)))
        out_elems = n * p * cout + n * cout
    else:
        out_shape = jax.ShapeDtypeStruct((n, p, 2 * cout), out_dtype)
        out_specs = pl.BlockSpec((tile, p, 2 * cout), lambda i: (i, 0, 0))
        out_elems = n * p * 2 * cout

    in_bytes = n * p * cin * 4 + cin * cout * 4 + cout * 4
    cost = pl.CostEstimate(flops=2 * n * p * cin * cout,
                           transcendentals=0,
                           bytes_accessed=in_bytes + out_elems * out_dtype.itemsize)

    kernel = functools.partial(_pfn_kernel, tile_n=tile, n_points=p,
                               last_layer=last_layer, split_outputs=split_outputs)

    out = pl.pallas_call(
        kernel,
        out_shape=out_shape,
        grid=grid,
        in_specs=in_specs,
        out_specs=out_specs,
        cost_estimate=cost,
        compiler_params=pltpu.CompilerParams(
            dimension_semantics=("parallel",),
            vmem_limit_bytes=vmem_limit_bytes),
    )(x2d, w_eff, bias)

    if last_layer:
        return out.reshape(n, 1, cout)    # restore keepdim shape (free reshape)
    return out                            # (N,P,2*Cout) or ((N,P,Cout), (N,Cout))


def pfn_layer_reference(inputs, weight, gamma, beta, running_mean, running_var,
                        *, eps=0.001, last_layer=False):
    x = jnp.einsum("npc,oc->npo", inputs, weight)
    x = (x - running_mean) / jnp.sqrt(running_var + eps) * gamma + beta
    x = jnp.maximum(x, 0.0)
    x_max = jnp.max(x, axis=1, keepdims=True)
    if last_layer:
        return x_max
    x_rep = jnp.broadcast_to(x_max, x.shape)
    return jnp.concatenate([x, x_rep], axis=-1)


if __name__ == "__main__":
    # Module config: in_channels=10, out_channels=64 -> effective out = 32 for a
    # non-last layer (out_channels // 2), use_norm=True.
    N_PILLARS, N_POINTS, C_IN, C_OUT_FULL = 64, 32, 10, 64
    C_OUT = C_OUT_FULL // 2

    key = jax.random.PRNGKey(0)
    k_in, k_w, k_g, k_b, k_m, k_v = jax.random.split(key, 6)

    inputs = jax.random.normal(k_in, (N_PILLARS, N_POINTS, C_IN), dtype=jnp.float32)
    weight = jax.random.normal(k_w, (C_OUT, C_IN), dtype=jnp.float32) * 0.1
    gamma = 1.0 + 0.1 * jax.random.normal(k_g, (C_OUT,), dtype=jnp.float32)
    beta = 0.1 * jax.random.normal(k_b, (C_OUT,), dtype=jnp.float32)
    running_mean = 0.1 * jax.random.normal(k_m, (C_OUT,), dtype=jnp.float32)
    running_var = jnp.abs(jax.random.normal(k_v, (C_OUT,), dtype=jnp.float32)) + 0.5
    bn_args = (weight, gamma, beta, running_mean, running_var)

    # Non-last layer, module-faithful concatenated output (grid of 2 parallel tiles).
    out = jax.block_until_ready(pfn_layer_forward(inputs, *bn_args, last_layer=False))
    ref = pfn_layer_reference(inputs, *bn_args, last_layer=False)
    assert out.shape == (N_PILLARS, N_POINTS, 2 * C_OUT), out.shape
    assert jnp.allclose(out, ref, atol=1e-4, rtol=1e-4), "non-last-layer mismatch"

    # Split-output mode: no repeated x_max slab written to HBM.
    y, y_max = pfn_layer_forward(inputs, *bn_args, last_layer=False, split_outputs=True)
    y, y_max = jax.block_until_ready((y, y_max))
    recon = jnp.concatenate([y, jnp.broadcast_to(y_max[:, None, :], y.shape)], axis=-1)
    assert jnp.allclose(recon, ref, atol=1e-4, rtol=1e-4), "split-output mismatch"

    # Ragged pillar count (partial last block; no jnp.pad / out[:N] copies).
    out_r = jax.block_until_ready(
        pfn_layer_forward(inputs[:50], *bn_args, last_layer=False, tile_n=16))
    ref_r = pfn_layer_reference(inputs[:50], *bn_args, last_layer=False)
    assert jnp.allclose(out_r, ref_r, atol=1e-4, rtol=1e-4), "ragged-N mismatch"

    # Last layer: output (N, 1, C_OUT_FULL) with weight shape (C_OUT_FULL, C_IN).
    weight_l = jax.random.normal(k_w, (C_OUT_FULL, C_IN), dtype=jnp.float32) * 0.1
    gamma_l = 1.0 + 0.1 * jax.random.normal(k_g, (C_OUT_FULL,), dtype=jnp.float32)
    beta_l = 0.1 * jax.random.normal(k_b, (C_OUT_FULL,), dtype=jnp.float32)
    mean_l = 0.1 * jax.random.normal(k_m, (C_OUT_FULL,), dtype=jnp.float32)
    var_l = jnp.abs(jax.random.normal(k_v, (C_OUT_FULL,), dtype=jnp.float32)) + 0.5
    out_l = jax.block_until_ready(
        pfn_layer_forward(inputs, weight_l, gamma_l, beta_l, mean_l, var_l, last_layer=True))
    ref_l = pfn_layer_reference(inputs, weight_l, gamma_l, beta_l, mean_l, var_l,
                                last_layer=True)
    assert out_l.shape == (N_PILLARS, 1, C_OUT_FULL), out_l.shape
    assert jnp.allclose(out_l, ref_l, atol=1e-4, rtol=1e-4), "last-layer mismatch"

    # Ragged last layer (partial block on the 2D max-pooled output).
    out_lr = jax.block_until_ready(
        pfn_layer_forward(inputs[:50], weight_l, gamma_l, beta_l, mean_l, var_l,
                          last_layer=True))
    ref_lr = pfn_layer_reference(inputs[:50], weight_l, gamma_l, beta_l, mean_l, var_l,
                                 last_layer=True)
    assert jnp.allclose(out_lr, ref_lr, atol=1e-4, rtol=1e-4), "ragged-last mismatch"

    print("KERNEL_OK")
</pallas_src>

<mosaic_0001>
module attributes {stable_mosaic.version = 11 : i64} {
  func.func @_pfn_kernel(%arg0: i32, %arg1: memref<1024x10xf32, #tpu.memory_space<vmem>>, %arg2: memref<10x32xf32, #tpu.memory_space<vmem>>, %arg3: memref<1x32xf32, #tpu.memory_space<vmem>>, %arg4: memref<32x32x64xf32, #tpu.memory_space<vmem>>) attributes {dimension_semantics = [#tpu.dimension_semantics<parallel>], iteration_bounds = array<i64: 2>, scalar_prefetch = 0 : i64, scratch_operands = 0 : i64, tpu.core_type = #tpu.core_type<tc>, window_params = [{transform_indices = @transform_0, window_bounds = array<i64: 1024, 10>}, {pipeline_mode = #tpu.pipeline_mode<synchronous>, transform_indices = @transform_1, window_bounds = array<i64: 10, 32>}, {pipeline_mode = #tpu.pipeline_mode<synchronous>, transform_indices = @transform_2, window_bounds = array<i64: 1, 32>}, {transform_indices = @transform_3, window_bounds = array<i64: 32, 32, 64>}]} {
    %c0 = arith.constant 0 : index
    %c0_0 = arith.constant 0 : index
    %0 = vector.load %arg1[%c0, %c0_0] : memref<1024x10xf32, #tpu.memory_space<vmem>>, vector<1024x10xf32>
    %c0_1 = arith.constant 0 : index
    %c0_2 = arith.constant 0 : index
    %1 = vector.load %arg2[%c0_1, %c0_2] : memref<10x32xf32, #tpu.memory_space<vmem>>, vector<10x32xf32>
    %cst = arith.constant dense<0.000000e+00> : vector<1024x32xf32>
    %2 = tpu.matmul %0, %1, %cst {dimension_numbers = #tpu.dot_dimension_numbers<[1], [0], [0], [1], [0, 0, 1, 1], [], []>} : vector<1024x10xf32>, vector<10x32xf32>, vector<1024x32xf32> -> vector<1024x32xf32>
    %c0_3 = arith.constant 0 : index
    %c0_4 = arith.constant 0 : index
    %3 = vector.load %arg3[%c0_3, %c0_4] : memref<1x32xf32, #tpu.memory_space<vmem>>, vector<1x32xf32>
    %4 = vector.broadcast %3 : vector<1x32xf32> to vector<1024x32xf32>
    %5 = arith.addf %2, %4 : vector<1024x32xf32>
    %cst_5 = arith.constant 0.000000e+00 : f32
    %6 = vector.broadcast %cst_5 : f32 to vector<1024x32xf32>
    %7 = arith.maximumf %5, %6 : vector<1024x32xf32>
    %8 = vector.shape_cast %7 : vector<1024x32xf32> to vector<32x32x32xf32>
    %cst_6 = arith.constant dense<0xFF800000> : vector<32x32xf32>
    %9 = vector.multi_reduction <maximumf>, %8, %cst_6 [1] : vector<32x32x32xf32> to vector<32x32xf32>
    %c0_7 = arith.constant 0 : index
    %c0_8 = arith.constant 0 : index
    %c0_9 = arith.constant 0 : index
    %10 = vector.load %arg4[%c0_7, %c0_8, %c0_9] : memref<32x32x64xf32, #tpu.memory_space<vmem>>, vector<32x32x32xf32>
    tpu.vector_store %arg4[%c0_7, %c0_8, %c0_9], %8 {strides = array<i32>} : memref<32x32x64xf32, #tpu.memory_space<vmem>>, vector<32x32x32xf32>,
    %11 = vector.shape_cast %9 : vector<32x32xf32> to vector<32x1x32xf32>
    %12 = vector.shape_cast %11 : vector<32x1x32xf32> to vector<32x1x32xf32>
    %13 = vector.broadcast %12 : vector<32x1x32xf32> to vector<32x32x32xf32>
    %c0_10 = arith.constant 0 : index
    %c0_11 = arith.constant 0 : index
    %c32 = arith.constant 32 : index
    %14 = vector.load %arg4[%c0_10, %c0_11, %c32] : memref<32x32x64xf32, #tpu.memory_space<vmem>>, vector<32x32x32xf32>
    tpu.vector_store %arg4[%c0_10, %c0_11, %c32], %13 {strides = array<i32>} : memref<32x32x64xf32, #tpu.memory_space<vmem>>, vector<32x32x32xf32>,
    return
  }
  func.func @transform_0(%arg0: i32) -> (i32, i32) {
    %c0_i32 = arith.constant 0 : i32
    %c0_i32_0 = arith.constant 0 : i32
    return %arg0, %c0_i32 : i32, i32
  }
  func.func @transform_1(%arg0: i32) -> (i32, i32) {
    %c0_i32 = arith.constant 0 : i32
    %c0_i32_0 = arith.constant 0 : i32
    %c0_i32_1 = arith.constant 0 : i32
    return %c0_i32, %c0_i32_0 : i32, i32
  }
  func.func @transform_2(%arg0: i32) -> (i32, i32) {
    %c0_i32 = arith.constant 0 : i32
    %c0_i32_0 = arith.constant 0 : i32
    %c0_i32_1 = arith.constant 0 : i32
    return %c0_i32, %c0_i32_0 : i32, i32
  }
  func.func @transform_3(%arg0: i32) -> (i32, i32, i32) {
    %c0_i32 = arith.constant 0 : i32
    %c0_i32_0 = arith.constant 0 : i32
    %c0_i32_1 = arith.constant 0 : i32
    return %arg0, %c0_i32, %c0_i32_0 : i32, i32, i32
  }
}

</mosaic_0001>

<bundles_post_ra>
// kernel: tpu_custom_call.1
= control target key start
LH: loop header
LB: loop body
LE: loop exit
PB: predicated region body
PF: predicated region fallthrough
CT: control target
= control target key end

     0   :  { %8 = vsyncpa [#allocation3], 0  ;;  %s3780_s0 = inlined_call_operand.vmem [shape: f32[2048,10], index: 0, kind: input, shape index: {}]   ;;  %s3781_s1 = inlined_call_operand.vmem [shape: f32[10,32], index: 1, kind: input, shape index: {}]   ;;  %s3782_s2 = inlined_call_operand.vmem [shape: f32[1,32], index: 2, kind: input, shape index: {}]   ;;  %s3783_s3 = inlined_call_operand.hbm [shape: f32[64,32,64], index: 3, kind: output, shape index: {}]  }
   0x1   :  { %10 = vsyncpa [#allocation3 + $0x1], 0  ;;  %s2387_s12 = smov 0   ;;  %s2389_s13 = smov 0  }
   0x2   :  { %s2391_s14 = smov 0   ;;  %s2393_s15 = smov 0  }
   0x3 LB: > { %s2408_s16 = sadd.s32 4294967295, %s2362_s15   ;;  %s2105_s17 = sadd.s32 4294967294, %s2362_s15   ;;  %s2362_s15 = sphi %s2393_s15, %s3789_s15   ;;  %s2358_s14 = sphi %s2391_s14, %s3788_s14   ;;  %s2354_s13 = sphi %s2389_s13, %s3787_s13   ;;  %s2350_s12 = sphi %s2387_s12, %s3786_s12  }
   0x4   : > { %s2412_s18 = sadd.s32 1, %s2362_s15   ;;  %s91_s19 = sadd.s32 1, %s2358_s14 }
   0x5   : > { %s88_s20 = ssub.s32 %s2362_s15, %s2412_s18  ;;  %p101_p0 = scmp.ne.s32.totalorder %s2358_s14, %s2354_s13 }
   0x6   : > { %p89_p1 = scmp.eq.s32.totalorder %s88_s20, 0  ;;  %p102_p2 = scmp.eq.s32.totalorder %s2408_s16, 1 }
   0x7   : > { %p107_p3 = scmp.ne.s32.totalorder %s2354_s13, %s2350_s12  ;;  %p108_p4 = scmp.eq.s32.totalorder %s2105_s17, 1 }
   0x8   : > { %s2423_s21 = scalar_select %p89_p1, %s2358_s14, %s91_s19  }
   0x9   : > { %p2425_p5 = por %p102_p2, %p101_p0  ;;  %p2429_p6 = por %p108_p4, %p107_p3 }
   0xa   : > { %p2108_p7 = scmp.ge.s32.totalorder %s2362_s15, 1  ;;  %p141_p8 = scmp.lt.s32.totalorder %s2362_s15, 3 }
   0xc   : > { %p142_p9 = pnand %p2108_p7, %p141_p8 }
   0xd   : > { %s2110_s28 = sshll.u32 (!%p142_p9), %s2408_s16, 7  ;;  %s162_s6 = sand.u32 (!%p142_p9), 1, %s2354_s13  }
   0xe   : > { %145 = sbr.rel (%p142_p9) target bundleno = 552 (0x228), region = 32  ;;  %p166_p10 = scmp.lt.s32.totalorder (!%p142_p9), %s2110_s28, 255 }
   0xf   : > { %s2109_s9 = sshll.u32 (!%p142_p9), %s162_s6, 10  ;;  %s2364_s11 = smov (!%p142_p9), 32  }
  0x10   : > { %s2599_s10 = scalar_lea.vmem (!%p142_p9), [#allocation2], %s2109_s9  ;;  %s2248_s25 = sshll.u32 (!%p142_p9), %s2408_s16, 10 }
  0x11   : > { %s2040_s16 = sshll.u32 (!%p142_p9), %s2599_s10, 4  ;;  %s2027_s30 = scalar_lea.sflag (!%p142_p9), [#allocation3], %s162_s6  ;;  %s2041_s16 = int_to_ptr.vmem [resolvable:$true] %s2040_s16 }
  0x12   : > { %s2320_s9 = scalar_lea.hbm (!%p142_p9), %s3783_s3, 2048 }
  0x13   : > { %v301_v0 = vld [vmem:[%s3781_s1 + $0x8] sm:$0x3]  ;;  %vm691_vm0 = vcmask 1041408   ;;  %v300_v1 = vld [vmem:[%s3781_s1] sm:$0xff]  ;;  %s3791_s28 = smov (!%p166_p10, %s2110_s28), 255  ;;  %vm306_vm1 = vcmask 80896  }
  0x14   : > { %2112 = vmatpush.msk.msra.mxu0 %vm691_vm0, %v301_v0  ;;  %2249 = vmatpush.msk.msra.mxu1 %vm691_vm0, %v301_v0  ;;  %s2111_s29 = sshll.u32 %s3791_s28, 3  ;;  %vm1224_vm2 = vcmask 261120   ;;  %vm1897_vm3 = vcmask 523520   ;;  %s2039_s28 = scalar_lea.hbm %s3783_s3, %s2248_s25 }
  0x15   : > { %2250 = vmatpush.msk.msra.mxu2 %vm691_vm0, %v301_v0  ;;  %2251 = vmatpush.msk.msra.mxu3 %vm691_vm0, %v301_v0  ;;  %s2445_s5 = scalar_lea.vmem %s3780_s0, %s2111_s29  ;;  %s2042_s29 = sshll.u32 %s2039_s28, 4  ;;  %s2043_s29 = int_to_ptr.hbm [resolvable:$true] %s2042_s29 }
  0x16   : > { %710 = vmatpush.msra.mxu0 %v300_v1  ;;  %2252 = vmatpush.msra.mxu1 %v300_v1  ;;  %v172_v2 = vld [vmem:[%s2445_s5] sm:$0xff]  ;;  %v173_v6 = vld [vmem:[%s2445_s5 + $0x8] sm:$0xff]  ;;  %v174_v10 = vld [vmem:[%s2445_s5 + $0x10] sm:$0xff]  ;;  %s2314_s4 = sshra.s32 %s2043_s29, 4  ;;  %s2315_s4 = int_to_ptr.hbm [resolvable:$true] %s2314_s4 }
  0x17   : > { %2253 = vmatpush.msra.mxu2 %v300_v1  ;;  %2254 = vmatpush.msra.mxu3 %v300_v1  ;;  %v204_v3 = vld [vmem:[%s2445_s5 + $0x100] sm:$0xff]  ;;  %v205_v7 = vld [vmem:[%s2445_s5 + $0x108] sm:$0xff]  ;;  %v206_v11 = vld [vmem:[%s2445_s5 + $0x110] sm:$0xff]  ;;  %p2321_p0 = scmp.lt.s32.totalorder %s2315_s4, %s3783_s3 }
  0x18   : > { %v236_v4 = vld [vmem:[%s2445_s5 + $0x200] sm:$0xff]  ;;  %2113 = vmatmul.msk.f32.vlgmr.msra.gmra.mxu0 %vm306_vm1, %v172_v2  ;;  %2145 = vmatmul.msk.f32.vlgmr.msra.gmra.mxu1 %vm306_vm1, %v204_v3  ;;  %v237_v8 = vld [vmem:[%s2445_s5 + $0x208] sm:$0xff]  ;;  %v238_v12 = vld [vmem:[%s2445_s5 + $0x210] sm:$0xff] }
  0x19   : > { %v268_v5 = vld [vmem:[%s2445_s5 + $0x300] sm:$0xff]  ;;  %2177 = vmatmul.msk.f32.vlgmr.msra.gmra.mxu2 %vm306_vm1, %v236_v4  ;;  %v269_v9 = vld [vmem:[%s2445_s5 + $0x308] sm:$0xff]  ;;  %v270_v13 = vld [vmem:[%s2445_s5 + $0x310] sm:$0xff] }
  0x1a   : > { %2209 = vmatmul.msk.f32.vlgmr.msra.gmra.mxu3 %vm306_vm1, %v268_v5  ;;  %v175_v14 = vld [vmem:[%s2445_s5 + $0x18] sm:$0xff]  ;;  %v176_v18 = vld [vmem:[%s2445_s5 + $0x20] sm:$0xff]  ;;  %v177_v22 = vld [vmem:[%s2445_s5 + $0x28] sm:$0xff] }
  0x1b   : > { %v207_v15 = vld [vmem:[%s2445_s5 + $0x118] sm:$0xff]  ;;  %v208_v19 = vld [vmem:[%s2445_s5 + $0x120] sm:$0xff]  ;;  %v209_v23 = vld [vmem:[%s2445_s5 + $0x128] sm:$0xff] }
  0x1c   : > { %v239_v16 = vld [vmem:[%s2445_s5 + $0x218] sm:$0xff]  ;;  %v240_v20 = vld [vmem:[%s2445_s5 + $0x220] sm:$0xff]  ;;  %v241_v24 = vld [vmem:[%s2445_s5 + $0x228] sm:$0xff] }
  0x1d   : > { %v271_v17 = vld [vmem:[%s2445_s5 + $0x318] sm:$0xff]  ;;  %v272_v21 = vld [vmem:[%s2445_s5 + $0x320] sm:$0xff]  ;;  %v273_v25 = vld [vmem:[%s2445_s5 + $0x328] sm:$0xff] }
  0x1e   : > { %v178_v26 = vld [vmem:[%s2445_s5 + $0x30] sm:$0xff]  ;;  %v179_v30 = vld [vmem:[%s2445_s5 + $0x38] sm:$0xff]  ;;  %v180_v34 = vld [vmem:[%s2445_s5 + $0x40] sm:$0xff] }
  0x1f   : > { %v210_v27 = vld [vmem:[%s2445_s5 + $0x130] sm:$0xff]  ;;  %v211_v31 = vld [vmem:[%s2445_s5 + $0x138] sm:$0xff]  ;;  %v212_v35 = vld [vmem:[%s2445_s5 + $0x140] sm:$0xff] }
  0x20   : > { %2114 = vmatmul.msk.f32.gmra.mxu0 %vm306_vm1, %v173_v6  ;;  %2146 = vmatmul.msk.f32.gmra.mxu1 %vm306_vm1, %v205_v7  ;;  %v242_v28 = vld [vmem:[%s2445_s5 + $0x230] sm:$0xff]  ;;  %v243_v32 = vld [vmem:[%s2445_s5 + $0x238] sm:$0xff]  ;;  %v244_v36 = vld [vmem:[%s2445_s5 + $0x240] sm:$0xff] }
  0x21   : > { %2178 = vmatmul.msk.f32.gmra.mxu2 %vm306_vm1, %v237_v8  ;;  %v274_v29 = vld [vmem:[%s2445_s5 + $0x330] sm:$0xff]  ;;  %v275_v33 = vld [vmem:[%s2445_s5 + $0x338] sm:$0xff]  ;;  %v276_v37 = vld [vmem:[%s2445_s5 + $0x340] sm:$0xff] }
  0x22   : > { %2210 = vmatmul.msk.f32.gmra.mxu3 %vm306_vm1, %v269_v9  ;;  %v181_v38 = vld [vmem:[%s2445_s5 + $0x48] sm:$0xff]  ;;  %v182_v42 = vld [vmem:[%s2445_s5 + $0x50] sm:$0xff]  ;;  %v183_v46 = vld [vmem:[%s2445_s5 + $0x58] sm:$0xff] }
  0x23   : > { %v213_v39 = vld [vmem:[%s2445_s5 + $0x148] sm:$0xff]  ;;  %v214_v43 = vld [vmem:[%s2445_s5 + $0x150] sm:$0xff]  ;;  %v215_v47 = vld [vmem:[%s2445_s5 + $0x158] sm:$0xff] }
  0x24   : > { %v245_v40 = vld [vmem:[%s2445_s5 + $0x248] sm:$0xff]  ;;  %v246_v44 = vld [vmem:[%s2445_s5 + $0x250] sm:$0xff]  ;;  %v247_v48 = vld [vmem:[%s2445_s5 + $0x258] sm:$0xff] }
  0x25   : > { %v277_v41 = vld [vmem:[%s2445_s5 + $0x348] sm:$0xff]  ;;  %v278_v45 = vld [vmem:[%s2445_s5 + $0x350] sm:$0xff]  ;;  %v279_v49 = vld [vmem:[%s2445_s5 + $0x358] sm:$0xff] }
  0x26   : > { %v184_v50 = vld [vmem:[%s2445_s5 + $0x60] sm:$0xff]  ;;  %v185_v54 = vld [vmem:[%s2445_s5 + $0x68] sm:$0xff]  ;;  %v186_v58 = vld [vmem:[%s2445_s5 + $0x70] sm:$0xff] }
  0x27   : > { %v216_v51 = vld [vmem:[%s2445_s5 + $0x160] sm:$0xff]  ;;  %v217_v55 = vld [vmem:[%s2445_s5 + $0x168] sm:$0xff]  ;;  %v218_v59 = vld [vmem:[%s2445_s5 + $0x170] sm:$0xff] }
  0x28   : > { %2115 = vmatmul.msk.f32.gmra.mxu0 %vm306_vm1, %v174_v10  ;;  %2147 = vmatmul.msk.f32.gmra.mxu1 %vm306_vm1, %v206_v11  ;;  %v248_v52 = vld [vmem:[%s2445_s5 + $0x260] sm:$0xff]  ;;  %v249_v56 = vld [vmem:[%s2445_s5 + $0x268] sm:$0xff]  ;;  %v250_v60 = vld [vmem:[%s2445_s5 + $0x270] sm:$0xff] }
  0x29   : > { %2179 = vmatmul.msk.f32.gmra.mxu2 %vm306_vm1, %v238_v12  ;;  %v280_v53 = vld [vmem:[%s2445_s5 + $0x360] sm:$0xff]  ;;  %v281_v57 = vld [vmem:[%s2445_s5 + $0x368] sm:$0xff]  ;;  %v282_v61 = vld [vmem:[%s2445_s5 + $0x370] sm:$0xff] }
  0x2a   : > { %2211 = vmatmul.msk.f32.gmra.mxu3 %vm306_vm1, %v270_v13  ;;  %v187_v62 = vld [vmem:[%s2445_s5 + $0x78] sm:$0xff]  ;;  %v2579_v2 = vld [vmem:[%s3782_s2] ss:$0 sm:$0xff] }
  0x2b   : > { %v219_v63 = vld [vmem:[%s2445_s5 + $0x178] sm:$0xff]  ;;  %v188_v5 = vld [vmem:[%s2445_s5 + $0x80] sm:$0xff] }
  0x2c   : > { %v251_v0 = vld [vmem:[%s2445_s5 + $0x278] sm:$0xff]  ;;  %v220_v6 = vld [vmem:[%s2445_s5 + $0x180] sm:$0xff] }
  0x2d   : > { %v283_v1 = vld [vmem:[%s2445_s5 + $0x378] sm:$0xff]  ;;  %v252_v9 = vld [vmem:[%s2445_s5 + $0x280] sm:$0xff] }
  0x2e   : > { %v284_v10 = vld [vmem:[%s2445_s5 + $0x380] sm:$0xff] }
  0x30   : > { %2116 = vmatmul.msk.f32.gmra.mxu0 %vm306_vm1, %v175_v14  ;;  %2148 = vmatmul.msk.f32.gmra.mxu1 %vm306_vm1, %v207_v15 }
  0x31   : > { %2180 = vmatmul.msk.f32.gmra.mxu2 %vm306_vm1, %v239_v16 }
  0x32   : > { %2212 = vmatmul.msk.f32.gmra.mxu3 %vm306_vm1, %v271_v17 }
  0x38   : > { %2117 = vmatmul.msk.f32.gmra.mxu0 %vm306_vm1, %v176_v18  ;;  %2149 = vmatmul.msk.f32.gmra.mxu1 %vm306_vm1, %v208_v19  ;;  %v189_v19 = vld [vmem:[%s2445_s5 + $0x88] sm:$0xff] }
  0x39   : > { %2181 = vmatmul.msk.f32.gmra.mxu2 %vm306_vm1, %v240_v20  ;;  %v221_v20 = vld [vmem:[%s2445_s5 + $0x188] sm:$0xff] }
  0x3a   : > { %2213 = vmatmul.msk.f32.gmra.mxu3 %vm306_vm1, %v272_v21 }
  0x40   : > { %2118 = vmatmul.msk.f32.gmra.mxu0 %vm306_vm1, %v177_v22  ;;  %2150 = vmatmul.msk.f32.gmra.mxu1 %vm306_vm1, %v209_v23  ;;  %v253_v23 = vld [vmem:[%s2445_s5 + $0x288] sm:$0xff] }
  0x41   : > { %2182 = vmatmul.msk.f32.gmra.mxu2 %vm306_vm1, %v241_v24  ;;  %v285_v24 = vld [vmem:[%s2445_s5 + $0x388] sm:$0xff] }
  0x42   : > { %2214 = vmatmul.msk.f32.gmra.mxu3 %vm306_vm1, %v273_v25 }
  0x48   : > { %2119 = vmatmul.msk.f32.gmra.mxu0 %vm306_vm1, %v178_v26  ;;  %2151 = vmatmul.msk.f32.gmra.mxu1 %vm306_vm1, %v210_v27 }
  0x49   : > { %2183 = vmatmul.msk.f32.gmra.mxu2 %vm306_vm1, %v242_v28 }
  0x4a   : > { %2215 = vmatmul.msk.f32.gmra.mxu3 %vm306_vm1, %v274_v29 }
  0x50   : > { %2120 = vmatmul.msk.f32.gmra.mxu0 %vm306_vm1, %v179_v30  ;;  %2152 = vmatmul.msk.f32.gmra.mxu1 %vm306_vm1, %v211_v31 }
  0x51   : > { %2184 = vmatmul.msk.f32.gmra.mxu2 %vm306_vm1, %v243_v32 }
  0x52   : > { %2216 = vmatmul.msk.f32.gmra.mxu3 %vm306_vm1, %v275_v33 }
  0x58   : > { %2121 = vmatmul.msk.f32.gmra.mxu0 %vm306_vm1, %v180_v34  ;;  %2153 = vmatmul.msk.f32.gmra.mxu1 %vm306_vm1, %v212_v35  ;;  %v190_v35 = vld [vmem:[%s2445_s5 + $0x90] sm:$0xff] }
  0x59   : > { %2185 = vmatmul.msk.f32.gmra.mxu2 %vm306_vm1, %v244_v36  ;;  %v222_v36 = vld [vmem:[%s2445_s5 + $0x190] sm:$0xff] }
  0x5a   : > { %2217 = vmatmul.msk.f32.gmra.mxu3 %vm306_vm1, %v276_v37 }
  0x60   : > { %2122 = vmatmul.msk.f32.gmra.mxu0 %vm306_vm1, %v181_v38  ;;  %2154 = vmatmul.msk.f32.gmra.mxu1 %vm306_vm1, %v213_v39  ;;  %v254_v39 = vld [vmem:[%s2445_s5 + $0x290] sm:$0xff] }
  0x61   : > { %2186 = vmatmul.msk.f32.gmra.mxu2 %vm306_vm1, %v245_v40  ;;  %v286_v40 = vld [vmem:[%s2445_s5 + $0x390] sm:$0xff] }
  0x62   : > { %2218 = vmatmul.msk.f32.gmra.mxu3 %vm306_vm1, %v277_v41 }
  0x68   : > { %2123 = vmatmul.msk.f32.gmra.mxu0 %vm306_vm1, %v182_v42  ;;  %2155 = vmatmul.msk.f32.gmra.mxu1 %vm306_vm1, %v214_v43 }
  0x69   : > { %2187 = vmatmul.msk.f32.gmra.mxu2 %vm306_vm1, %v246_v44 }
  0x6a   : > { %2219 = vmatmul.msk.f32.gmra.mxu3 %vm306_vm1, %v278_v45 }
  0x70   : > { %2124 = vmatmul.msk.f32.gmra.mxu0 %vm306_vm1, %v183_v46  ;;  %2156 = vmatmul.msk.f32.gmra.mxu1 %vm306_vm1, %v215_v47 }
  0x71   : > { %2188 = vmatmul.msk.f32.gmra.mxu2 %vm306_vm1, %v247_v48 }
  0x72   : > { %2220 = vmatmul.msk.f32.gmra.mxu3 %vm306_vm1, %v279_v49 }
  0x78   : > { %2125 = vmatmul.msk.f32.gmra.mxu0 %vm306_vm1, %v184_v50  ;;  %2157 = vmatmul.msk.f32.gmra.mxu1 %vm306_vm1, %v216_v51 }
  0x79   : > { %2189 = vmatmul.msk.f32.gmra.mxu2 %vm306_vm1, %v248_v52 }
  0x7a   : > { %2221 = vmatmul.msk.f32.gmra.mxu3 %vm306_vm1, %v280_v53 }
  0x80   : > { %2126 = vmatmul.msk.f32.gmra.mxu0 %vm306_vm1, %v185_v54  ;;  %2158 = vmatmul.msk.f32.gmra.mxu1 %vm306_vm1, %v217_v55  ;;  %v191_v55 = vld [vmem:[%s2445_s5 + $0x98] sm:$0xff] }
  0x81   : > { %2190 = vmatmul.msk.f32.gmra.mxu2 %vm306_vm1, %v249_v56  ;;  %v223_v56 = vld [vmem:[%s2445_s5 + $0x198] sm:$0xff] }
  0x82   : > { %2222 = vmatmul.msk.f32.gmra.mxu3 %vm306_vm1, %v281_v57 }
  0x88   : > { %2127 = vmatmul.msk.f32.gmra.mxu0 %vm306_vm1, %v186_v58  ;;  %2159 = vmatmul.msk.f32.gmra.mxu1 %vm306_vm1, %v218_v59 }
  0x89   : > { %2191 = vmatmul.msk.f32.gmra.mxu2 %vm306_vm1, %v250_v60 }
  0x8a   : > { %2223 = vmatmul.msk.f32.gmra.mxu3 %vm306_vm1, %v282_v61  ;;  %v255_v61 = vld [vmem:[%s2445_s5 + $0x298] sm:$0xff] }
  0x90   : > { %2128 = vmatmul.msk.f32.gmra.mxu0 %vm306_vm1, %v187_v62  ;;  %2160 = vmatmul.msk.f32.gmra.mxu1 %vm306_vm1, %v219_v63  ;;  %v287_v62 = vld [vmem:[%s2445_s5 + $0x398] sm:$0xff] }
  0x91   : > { %2192 = vmatmul.msk.f32.gmra.mxu2 %vm306_vm1, %v251_v0 }
  0x92   : > { %2224 = vmatmul.msk.f32.gmra.mxu3 %vm306_vm1, %v283_v1 }
  0x95   : > { %v712_v3 = vpop.f32.mrf.mxu0  ;;  %v808_v4 = vpop.f32.mrf.mxu1 }
  0x96   : > { %v2586_v7 = vadd.f32 %v2579_v2, %v712_v3  ;;  %v2589_v8 = vadd.f32 %v2579_v2, %v808_v4 }
  0x98   : > { %v1096_v11 = vmax.f32 %v2586_v7, 0.0  ;;  %v1128_v12 = vmax.f32 %v2589_v8, 0.0  ;;  %2129 = vmatmul.msk.f32.gmra.mxu0 %vm306_vm1, %v188_v5  ;;  %2161 = vmatmul.msk.f32.gmra.mxu1 %vm306_vm1, %v220_v6 }
  0x99   : > { %2193 = vmatmul.msk.f32.gmra.mxu2 %vm306_vm1, %v252_v9 }
  0x9a   : > { %2225 = vmatmul.msk.f32.gmra.mxu3 %vm306_vm1, %v284_v10  ;;  %1641 = vst.msk [vmem:[%s2599_s10] sm:$0xff] %vm1224_vm2, %v1096_v11  ;;  %v1225_v49 = vsel %vm1224_vm2, %v1096_v11, -inf  ;;  %v1329_v50 = vsel %vm1224_vm2, %v1128_v12, -inf }
  0x9b   : > { %1673 = vst.msk [vmem:[%s2599_s10 + $0x100] sm:$0xff] %vm1224_vm2, %v1128_v12 }
  0x9c   : > { %v904_v13 = vpop.f32.mrf.mxu2 }
  0x9d   : > { %v1000_v14 = vpop.f32.mrf.mxu3  ;;  %v2606_v15 = vadd.f32 %v2579_v2, %v904_v13  ;;  %v715_v17 = vpop.f32.mrf.mxu0 }
  0x9e   : > { %v2609_v16 = vadd.f32 %v2579_v2, %v1000_v14  ;;  %v811_v18 = vpop.f32.mrf.mxu1  ;;  %v716_v21 = vadd.f32 %v2579_v2, %v715_v17 }
  0x9f   : > { %v812_v22 = vadd.f32 %v2579_v2, %v811_v18  ;;  %v1160_v25 = vmax.f32 %v2606_v15, 0.0 }
  0xa0   : > { %v1192_v26 = vmax.f32 %v2609_v16, 0.0  ;;  %v1097_v27 = vmax.f32 %v716_v21, 0.0  ;;  %2130 = vmatmul.msk.f32.gmra.mxu0 %vm306_vm1, %v189_v19  ;;  %2162 = vmatmul.msk.f32.gmra.mxu1 %vm306_vm1, %v221_v20 }
  0xa1   : > { %v1129_v28 = vmax.f32 %v812_v22, 0.0  ;;  %1705 = vst.msk [vmem:[%s2599_s10 + $0x200] sm:$0xff] %vm1224_vm2, %v1160_v25  ;;  %2194 = vmatmul.msk.f32.gmra.mxu2 %vm306_vm1, %v253_v23  ;;  %v1433_v6 = vsel %vm1224_vm2, %v1160_v25, -inf }
  0xa2   : > { %2226 = vmatmul.msk.f32.gmra.mxu3 %vm306_vm1, %v285_v24  ;;  %1737 = vst.msk [vmem:[%s2599_s10 + $0x300] sm:$0xff] %vm1224_vm2, %v1192_v26  ;;  %v1226_v45 = vsel %vm1224_vm2, %v1097_v27, -inf  ;;  %v1537_v15 = vsel %vm1224_vm2, %v1192_v26, -inf  ;;  %v192_v26 = vld [vmem:[%s2445_s5 + $0xa0] sm:$0xff] }
  0xa3   : > { %1642 = vst.msk [vmem:[%s2599_s10 + $0x8] sm:$0xff] %vm1224_vm2, %v1097_v27  ;;  %v1330_v46 = vsel %vm1224_vm2, %v1129_v28, -inf  ;;  %v1227_v63 = vmax.f32 %v1225_v49, %v1226_v45 }
  0xa4   : > { %1674 = vst.msk [vmem:[%s2599_s10 + $0x108] sm:$0xff] %vm1224_vm2, %v1129_v28  ;;  %v907_v29 = vpop.f32.mrf.mxu2  ;;  %v1331_v0 = vmax.f32 %v1329_v50, %v1330_v46  ;;  %v224_v28 = vld [vmem:[%s2445_s5 + $0x1a0] sm:$0xff] }
  0xa5   : > { %v1003_v30 = vpop.f32.mrf.mxu3  ;;  %v908_v31 = vadd.f32 %v2579_v2, %v907_v29  ;;  %v718_v33 = vpop.f32.mrf.mxu0 }
  0xa6   : > { %v1004_v32 = vadd.f32 %v2579_v2, %v1003_v30  ;;  %v814_v34 = vpop.f32.mrf.mxu1  ;;  %v719_v37 = vadd.f32 %v2579_v2, %v718_v33  ;;  %v288_v33 = vld [vmem:[%s2445_s5 + $0x3a0] sm:$0xff] }
  0xa7   : > { %v815_v38 = vadd.f32 %v2579_v2, %v814_v34  ;;  %v1161_v41 = vmax.f32 %v908_v31, 0.0 }
  0xa8   : > { %v1193_v42 = vmax.f32 %v1004_v32, 0.0  ;;  %v1098_v43 = vmax.f32 %v719_v37, 0.0  ;;  %2131 = vmatmul.msk.f32.gmra.mxu0 %vm306_vm1, %v190_v35  ;;  %2163 = vmatmul.msk.f32.gmra.mxu1 %vm306_vm1, %v222_v36  ;;  %v256_v32 = vld [vmem:[%s2445_s5 + $0x2a0] sm:$0xff] }
  0xa9   : > { %v1130_v44 = vmax.f32 %v815_v38, 0.0  ;;  %1706 = vst.msk [vmem:[%s2599_s10 + $0x208] sm:$0xff] %vm1224_vm2, %v1161_v41  ;;  %2195 = vmatmul.msk.f32.gmra.mxu2 %vm306_vm1, %v254_v39  ;;  %v1434_v7 = vsel %vm1224_vm2, %v1161_v41, -inf }
  0xaa   : > { %2227 = vmatmul.msk.f32.gmra.mxu3 %vm306_vm1, %v286_v40  ;;  %1738 = vst.msk [vmem:[%s2599_s10 + $0x308] sm:$0xff] %vm1224_vm2, %v1193_v42  ;;  %v1228_v57 = vsel %vm1224_vm2, %v1098_v43, -inf  ;;  %v1538_v12 = vsel %vm1224_vm2, %v1193_v42, -inf  ;;  %v1435_v17 = vmax.f32 %v1433_v6, %v1434_v7 }
  0xab   : > { %1643 = vst.msk [vmem:[%s2599_s10 + $0x10] sm:$0xff] %vm1224_vm2, %v1098_v43  ;;  %v1332_v58 = vsel %vm1224_vm2, %v1130_v44, -inf  ;;  %v1229_v8 = vmax.f32 %v1227_v63, %v1228_v57  ;;  %v1539_v29 = vmax.f32 %v1537_v15, %v1538_v12 }
  0xac   : > { %1675 = vst.msk [vmem:[%s2599_s10 + $0x110] sm:$0xff] %vm1224_vm2, %v1130_v44  ;;  %v910_v47 = vpop.f32.mrf.mxu2  ;;  %v1333_v9 = vmax.f32 %v1331_v0, %v1332_v58  ;;  %v193_v58 = vld [vmem:[%s2445_s5 + $0xa8] sm:$0xff] }
  0xad   : > { %v1006_v48 = vpop.f32.mrf.mxu3  ;;  %v911_v51 = vadd.f32 %v2579_v2, %v910_v47  ;;  %v721_v53 = vpop.f32.mrf.mxu0 }
  0xae   : > { %v1007_v52 = vadd.f32 %v2579_v2, %v1006_v48  ;;  %v817_v54 = vpop.f32.mrf.mxu1  ;;  %v722_v59 = vadd.f32 %v2579_v2, %v721_v53 }
  0xaf   : > { %v818_v60 = vadd.f32 %v2579_v2, %v817_v54  ;;  %v1162_v1 = vmax.f32 %v911_v51, 0.0 }
  0xb0   : > { %v1194_v3 = vmax.f32 %v1007_v52, 0.0  ;;  %v1099_v4 = vmax.f32 %v722_v59, 0.0  ;;  %2132 = vmatmul.msk.f32.gmra.mxu0 %vm306_vm1, %v191_v55  ;;  %2164 = vmatmul.msk.f32.gmra.mxu1 %vm306_vm1, %v223_v56  ;;  %v225_v59 = vld [vmem:[%s2445_s5 + $0x1a8] sm:$0xff] }
  0xb1   : > { %v1131_v5 = vmax.f32 %v818_v60, 0.0  ;;  %1707 = vst.msk [vmem:[%s2599_s10 + $0x210] sm:$0xff] %vm1224_vm2, %v1162_v1  ;;  %2196 = vmatmul.msk.f32.gmra.mxu2 %vm306_vm1, %v255_v61  ;;  %v1436_v18 = vsel %vm1224_vm2, %v1162_v1, -inf  ;;  %v257_v1 = vld [vmem:[%s2445_s5 + $0x2a8] sm:$0xff] }
  0xb2   : > { %2228 = vmatmul.msk.f32.gmra.mxu3 %vm306_vm1, %v287_v62  ;;  %1739 = vst.msk [vmem:[%s2599_s10 + $0x310] sm:$0xff] %vm1224_vm2, %v1194_v3  ;;  %v1230_v10 = vsel %vm1224_vm2, %v1099_v4, -inf  ;;  %v1540_v19 = vsel %vm1224_vm2, %v1194_v3, -inf  ;;  %v1437_v38 = vmax.f32 %v1435_v17, %v1436_v18  ;;  %v289_v3 = vld [vmem:[%s2445_s5 + $0x3a8] sm:$0xff] }
  0xb3   : > { %v1334_v11 = vsel %vm1224_vm2, %v1131_v5, -inf  ;;  %v1231_v13 = vmax.f32 %v1229_v8, %v1230_v10  ;;  %1644 = vst.msk [vmem:[%s2599_s10 + $0x18] sm:$0xff] %vm1224_vm2, %v1099_v4  ;;  %v1541_v39 = vmax.f32 %v1539_v29, %v1540_v19 }
  0xb4   : > { %v1335_v14 = vmax.f32 %v1333_v9, %v1334_v11  ;;  %1676 = vst.msk [vmem:[%s2599_s10 + $0x118] sm:$0xff] %vm1224_vm2, %v1131_v5  ;;  %v913_v20 = vpop.f32.mrf.mxu2 }
  0xb5   : > { %v1009_v21 = vpop.f32.mrf.mxu3  ;;  %v1232_v22 = vrot.slane %v1231_v13, 4  ;;  %v914_v24 = vadd.f32 %v2579_v2, %v913_v20  ;;  %v724_v16 = vpop.f32.mrf.mxu0 }
  0xb6   : > { %v1336_v23 = vrot.slane %v1335_v14, 4  ;;  %v1010_v25 = vadd.f32 %v2579_v2, %v1009_v21  ;;  %v820_v27 = vpop.f32.mrf.mxu1  ;;  %v2694_v30 = vadd.f32 %v2579_v2, %v724_v16 }
  0xb7   : > { %v2697_v31 = vadd.f32 %v2579_v2, %v820_v27  ;;  %v1163_v34 = vmax.f32 %v914_v24, 0.0  ;;  %v1233_v37 = vmax.f32 %v1231_v13, %v1232_v22  ;;  %v194_v24 = vld [vmem:[%s2445_s5 + $0xb0] sm:$0xff] }
  0xb8   : > { %v1195_v35 = vmax.f32 %v1010_v25, 0.0  ;;  %v1337_v36 = vmax.f32 %v1335_v14, %v1336_v23  ;;  %v1100_v40 = vmax.f32 %v2694_v30, 0.0  ;;  %2133 = vmatmul.msk.f32.gmra.mxu0 %vm306_vm1, %v192_v26  ;;  %2165 = vmatmul.msk.f32.gmra.mxu1 %vm306_vm1, %v224_v28  ;;  %v226_v26 = vld [vmem:[%s2445_s5 + $0x1b0] sm:$0xff] }
  0xb9   : > { %v1132_v41 = vmax.f32 %v2697_v31, 0.0  ;;  %v1438_v42 = vsel %vm1224_vm2, %v1163_v34, -inf  ;;  %1708 = vst.msk [vmem:[%s2599_s10 + $0x218] sm:$0xff] %vm1224_vm2, %v1163_v34  ;;  %2197 = vmatmul.msk.f32.gmra.mxu2 %vm306_vm1, %v256_v32  ;;  %v1234_v45 = vrot.slane %v1233_v37, 2  ;;  %v258_v28 = vld [vmem:[%s2445_s5 + $0x2b0] sm:$0xff]  ;;  %v227_v31 = vld [vmem:[%s2445_s5 + $0x1b8] sm:$0xff] }
  0xba   : > { %v1542_v43 = vsel %vm1224_vm2, %v1195_v35, -inf  ;;  %2229 = vmatmul.msk.f32.gmra.mxu3 %vm306_vm1, %v288_v33  ;;  %v1338_v44 = vrot.slane %v1337_v36, 2  ;;  %v1439_v46 = vmax.f32 %v1437_v38, %v1438_v42  ;;  %1740 = vst.msk [vmem:[%s2599_s10 + $0x318] sm:$0xff] %vm1224_vm2, %v1195_v35  ;;  %v290_v32 = vld [vmem:[%s2445_s5 + $0x3b0] sm:$0xff] }
  0xbb   : > { %v1543_v47 = vmax.f32 %v1541_v39, %v1542_v43  ;;  %1645 = vst.msk [vmem:[%s2599_s10 + $0x20] sm:$0xff] %vm1224_vm2, %v1100_v40  ;;  %v1235_v49 = vmax.f32 %v1233_v37, %v1234_v45  ;;  %v1238_v43 = vsel %vm1224_vm2, %v1100_v40, -inf }
  0xbc   : > { %v1339_v48 = vmax.f32 %v1337_v36, %v1338_v44  ;;  %v1440_v50 = vrot.slane %v1439_v46, 4  ;;  %1677 = vst.msk [vmem:[%s2599_s10 + $0x120] sm:$0xff] %vm1224_vm2, %v1132_v41  ;;  %v916_v52 = vpop.f32.mrf.mxu2  ;;  %v1342_v44 = vsel %vm1224_vm2, %v1132_v41, -inf }
  0xbd   : > { %v1544_v51 = vrot.slane %v1543_v47, 4  ;;  %v1012_v53 = vpop.f32.mrf.mxu3  ;;  %v2722_v54 = vadd.f32 %v2579_v2, %v916_v52  ;;  %v727_v56 = vpop.f32.mrf.mxu0  ;;  %v1236_v61 = vrot.slane %v1235_v49, 1  ;;  %v259_v52 = vld [vmem:[%s2445_s5 + $0x2b8] sm:$0xff] }
  0xbe   : > { %v2725_v55 = vadd.f32 %v2579_v2, %v1012_v53  ;;  %v823_v57 = vpop.f32.mrf.mxu1  ;;  %v1340_v60 = vrot.slane %v1339_v48, 1  ;;  %v728_v63 = vadd.f32 %v2579_v2, %v727_v56  ;;  %v1441_v4 = vmax.f32 %v1439_v46, %v1440_v50 }
  0xbf   : > { %v1545_v62 = vmax.f32 %v1543_v47, %v1544_v51  ;;  %v824_v0 = vadd.f32 %v2579_v2, %v823_v57  ;;  %v1164_v5 = vmax.f32 %v2722_v54, 0.0  ;;  %v1237_v8 = vmax.f32 %v1235_v49, %v1236_v61  ;;  %v195_v49 = vld [vmem:[%s2445_s5 + $0xb8] sm:$0xff] }
  0xc0   : > { %v1196_v6 = vmax.f32 %v2725_v55, 0.0  ;;  %v1341_v7 = vmax.f32 %v1339_v48, %v1340_v60  ;;  %v1101_v9 = vmax.f32 %v728_v63, 0.0  ;;  %2134 = vmatmul.msk.f32.gmra.mxu0 %vm306_vm1, %v193_v58  ;;  %2166 = vmatmul.msk.f32.gmra.mxu1 %vm306_vm1, %v225_v59  ;;  %v1442_v11 = vrot.slane %v1441_v4, 2  ;;  %v291_v57 = vld [vmem:[%s2445_s5 + $0x3b8] sm:$0xff] }
  0xc1   : > { %v1133_v10 = vmax.f32 %v824_v0, 0.0  ;;  %v1546_v12 = vrot.slane %v1545_v62, 2  ;;  %1709 = vst.msk [vmem:[%s2599_s10 + $0x220] sm:$0xff] %vm1224_vm2, %v1164_v5  ;;  %2198 = vmatmul.msk.f32.gmra.mxu2 %vm306_vm1, %v257_v1  ;;  %1801 = vrot.lane.b32.xlu0 %v1237_v8, %s2364_s11  ;;  %v1446_v61 = vsel %vm1224_vm2, %v1164_v5, -inf }
  0xc2   : > { %2230 = vmatmul.msk.f32.gmra.mxu3 %vm306_vm1, %v289_v3  ;;  %1741 = vst.msk [vmem:[%s2599_s10 + $0x320] sm:$0xff] %vm1224_vm2, %v1196_v6  ;;  %1817 = vrot.lane.b32.xlu2 %v1341_v7, %s2364_s11  ;;  %v1443_v13 = vmax.f32 %v1441_v4, %v1442_v11  ;;  %v1239_v37 = vsel %vm1224_vm2, %v1101_v9, -inf  ;;  %v1550_v7 = vsel %vm1224_vm2, %v1196_v6, -inf }
  0xc3   : > { %v1547_v14 = vmax.f32 %v1545_v62, %v1546_v12  ;;  %1646 = vst.msk [vmem:[%s2599_s10 + $0x28] sm:$0xff] %vm1224_vm2, %v1101_v9  ;;  %v1343_v38 = vsel %vm1224_vm2, %v1133_v10, -inf  ;;  %v1240_v41 = vmax.f32 %v1238_v43, %v1239_v37 }
  0xc4   : > { %1678 = vst.msk [vmem:[%s2599_s10 + $0x128] sm:$0xff] %vm1224_vm2, %v1133_v10  ;;  %v919_v15 = vpop.f32.mrf.mxu2  ;;  %v1444_v18 = vrot.slane %v1443_v13, 1  ;;  %v1344_v53 = vmax.f32 %v1342_v44, %v1343_v38 }
  0xc5   : > { %v1015_v17 = vpop.f32.mrf.mxu3  ;;  %v1548_v19 = vrot.slane %v1547_v14, 1  ;;  %v920_v20 = vadd.f32 %v2579_v2, %v919_v15  ;;  %v730_v22 = vpop.f32.mrf.mxu0 }
  0xc6   : > { %v1016_v21 = vadd.f32 %v2579_v2, %v1015_v17  ;;  %v826_v23 = vpop.f32.mrf.mxu1  ;;  %v731_v25 = vadd.f32 %v2579_v2, %v730_v22  ;;  %v1445_v27 = vmax.f32 %v1443_v13, %v1444_v18  ;;  %v196_v18 = vld [vmem:[%s2445_s5 + $0xc0] sm:$0xff] }
  0xc7   : > { %v827_v16 = vadd.f32 %v2579_v2, %v826_v23  ;;  %v1165_v29 = vmax.f32 %v920_v20, 0.0  ;;  %v1549_v36 = vmax.f32 %v1547_v14, %v1548_v19  ;;  %v228_v22 = vld [vmem:[%s2445_s5 + $0x1c0] sm:$0xff] }
  0xc8   : > { %v1197_v33 = vmax.f32 %v1016_v21, 0.0  ;;  %v1102_v34 = vmax.f32 %v731_v25, 0.0  ;;  %1833 = vrot.lane.b32.xlu1 %v1445_v27, %s2364_s11  ;;  %2135 = vmatmul.msk.f32.gmra.mxu0 %vm306_vm1, %v194_v24  ;;  %v260_v23 = vld [vmem:[%s2445_s5 + $0x2c0] sm:$0xff] }
  0xc9   : > { %v1134_v35 = vmax.f32 %v827_v16, 0.0  ;;  %1710 = vst.msk [vmem:[%s2599_s10 + $0x228] sm:$0xff] %vm1224_vm2, %v1165_v29  ;;  %2167 = vmatmul.msk.f32.gmra.mxu1 %vm306_vm1, %v226_v26  ;;  %2199 = vmatmul.msk.f32.gmra.mxu2 %vm306_vm1, %v258_v28  ;;  %v1447_v62 = vsel %vm1224_vm2, %v1165_v29, -inf  ;;  %v292_v27 = vld [vmem:[%s2445_s5 + $0x3c0] sm:$0xff] }
  0xca   : > { %1742 = vst.msk [vmem:[%s2599_s10 + $0x328] sm:$0xff] %vm1224_vm2, %v1197_v33  ;;  %2231 = vmatmul.msk.f32.gmra.mxu3 %vm306_vm1, %v290_v32  ;;  %1849 = vrot.lane.b32.xlu0 %v1549_v36, %s2364_s11  ;;  %v1241_v50 = vsel %vm1224_vm2, %v1102_v34, -inf  ;;  %v1551_v54 = vsel %vm1224_vm2, %v1197_v33, -inf  ;;  %v1448_v8 = vmax.f32 %v1446_v61, %v1447_v62 }
  0xcb   : > { %1647 = vst.msk [vmem:[%s2599_s10 + $0x30] sm:$0xff] %vm1224_vm2, %v1102_v34  ;;  %v1345_v51 = vsel %vm1224_vm2, %v1134_v35, -inf  ;;  %v1242_v63 = vmax.f32 %v1240_v41, %v1241_v50  ;;  %v1552_v19 = vmax.f32 %v1550_v7, %v1551_v54  ;;  %v197_v50 = vld [vmem:[%s2445_s5 + $0xc8] sm:$0xff] }
  0xcc   : > { %1679 = vst.msk [vmem:[%s2599_s10 + $0x130] sm:$0xff] %vm1224_vm2, %v1134_v35  ;;  %v922_v39 = vpop.f32.mrf.mxu2  ;;  %v1346_v0 = vmax.f32 %v1344_v53, %v1345_v51  ;;  %v229_v53 = vld [vmem:[%s2445_s5 + $0x1c8] sm:$0xff] }
  0xcd   : > { %v1018_v42 = vpop.f32.mrf.mxu3  ;;  %v923_v45 = vadd.f32 %v2579_v2, %v922_v39  ;;  %v733_v47 = vpop.f32.mrf.mxu0 }
  0xce   : > { %v1019_v46 = vadd.f32 %v2579_v2, %v1018_v42  ;;  %v829_v48 = vpop.f32.mrf.mxu1  ;;  %v734_v30 = vadd.f32 %v2579_v2, %v733_v47 }
  0xcf   : > { %v830_v40 = vadd.f32 %v2579_v2, %v829_v48  ;;  %v1166_v56 = vmax.f32 %v923_v45, 0.0 }
  0xd0   : > { %v1198_v58 = vmax.f32 %v1019_v46, 0.0  ;;  %v1103_v59 = vmax.f32 %v734_v30, 0.0  ;;  %2136 = vmatmul.msk.f32.gmra.mxu0 %vm306_vm1, %v195_v49 }
  0xd1   : > { %v1135_v60 = vmax.f32 %v830_v40, 0.0  ;;  %1711 = vst.msk [vmem:[%s2599_s10 + $0x230] sm:$0xff] %vm1224_vm2, %v1166_v56  ;;  %2168 = vmatmul.msk.f32.gmra.mxu1 %vm306_vm1, %v227_v31  ;;  %2200 = vmatmul.msk.f32.gmra.mxu2 %vm306_vm1, %v259_v52  ;;  %v1449_v9 = vsel %vm1224_vm2, %v1166_v56, -inf  ;;  %v261_v56 = vld [vmem:[%s2445_s5 + $0x2c8] sm:$0xff] }
  0xd2   : > { %1743 = vst.msk [vmem:[%s2599_s10 + $0x330] sm:$0xff] %vm1224_vm2, %v1198_v58  ;;  %v1243_v1 = vsel %vm1224_vm2, %v1103_v59, -inf  ;;  %2232 = vmatmul.msk.f32.gmra.mxu3 %vm306_vm1, %v291_v57  ;;  %v1553_v10 = vsel %vm1224_vm2, %v1198_v58, -inf  ;;  %v1450_v26 = vmax.f32 %v1448_v8, %v1449_v9 }
  0xd3   : > { %v1347_v3 = vsel %vm1224_vm2, %v1135_v60, -inf  ;;  %v1244_v4 = vmax.f32 %v1242_v63, %v1243_v1  ;;  %1648 = vst.msk [vmem:[%s2599_s10 + $0x38] sm:$0xff] %vm1224_vm2, %v1103_v59  ;;  %v1554_v28 = vmax.f32 %v1552_v19, %v1553_v10  ;;  %v293_v59 = vld [vmem:[%s2445_s5 + $0x3c8] sm:$0xff] }
  0xd4   : > { %v1348_v5 = vmax.f32 %v1346_v0, %v1347_v3  ;;  %1680 = vst.msk [vmem:[%s2599_s10 + $0x138] sm:$0xff] %vm1224_vm2, %v1135_v60  ;;  %v925_v11 = vpop.f32.mrf.mxu2 }
  0xd5   : > { %v1021_v12 = vpop.f32.mrf.mxu3  ;;  %v1245_v13 = vrot.slane %v1244_v4, 4  ;;  %v926_v15 = vadd.f32 %v2579_v2, %v925_v11  ;;  %v736_v17 = vpop.f32.mrf.mxu0 }
  0xd6   : > { %v1349_v14 = vrot.slane %v1348_v5, 4  ;;  %v1022_v55 = vadd.f32 %v2579_v2, %v1021_v12  ;;  %v832_v6 = vpop.f32.mrf.mxu1  ;;  %v2821_v20 = vadd.f32 %v2579_v2, %v736_v17 }
  0xd7   : > { %v2824_v21 = vadd.f32 %v2579_v2, %v832_v6  ;;  %v1246_v24 = vmax.f32 %v1244_v4, %v1245_v13  ;;  %v1167_v25 = vmax.f32 %v926_v15, 0.0  ;;  %v198_v6 = vld [vmem:[%s2445_s5 + $0xd0] sm:$0xff] }
  0xd8   : > { %v1199_v16 = vmax.f32 %v1022_v55, 0.0  ;;  %v1104_v29 = vmax.f32 %v2821_v20, 0.0  ;;  %2137 = vmatmul.msk.f32.gmra.mxu0 %vm306_vm1, %v196_v18  ;;  %v1350_v33 = vmax.f32 %v1348_v5, %v1349_v14  ;;  %v230_v18 = vld [vmem:[%s2445_s5 + $0x1d0] sm:$0xff] }
  0xd9   : > { %v1136_v32 = vmax.f32 %v2824_v21, 0.0  ;;  %v1451_v34 = vsel %vm1224_vm2, %v1167_v25, -inf  ;;  %1712 = vst.msk [vmem:[%s2599_s10 + $0x238] sm:$0xff] %vm1224_vm2, %v1167_v25  ;;  %2169 = vmatmul.msk.f32.gmra.mxu1 %vm306_vm1, %v228_v22  ;;  %2201 = vmatmul.msk.f32.gmra.mxu2 %vm306_vm1, %v260_v23  ;;  %v1247_v36 = vrot.slane %v1246_v24, 2  ;;  %v262_v22 = vld [vmem:[%s2445_s5 + $0x2d0] sm:$0xff]  ;;  %v231_v21 = vld [vmem:[%s2445_s5 + $0x1d8] sm:$0xff] }
  0xda   : > { %v1555_v35 = vsel %vm1224_vm2, %v1199_v16, -inf  ;;  %v1452_v37 = vmax.f32 %v1450_v26, %v1451_v34  ;;  %1744 = vst.msk [vmem:[%s2599_s10 + $0x338] sm:$0xff] %vm1224_vm2, %v1199_v16  ;;  %2233 = vmatmul.msk.f32.gmra.mxu3 %vm306_vm1, %v292_v27  ;;  %v1351_v30 = vrot.slane %v1350_v33, 2  ;;  %v294_v23 = vld [vmem:[%s2445_s5 + $0x3d0] sm:$0xff] }
  0xdb   : > { %v1556_v38 = vmax.f32 %v1554_v28, %v1555_v35  ;;  %1649 = vst.msk [vmem:[%s2599_s10 + $0x40] sm:$0xff] %vm1224_vm2, %v1104_v29  ;;  %v1248_v39 = vmax.f32 %v1246_v24, %v1247_v36  ;;  %v1251_v35 = vsel %vm1224_vm2, %v1104_v29, -inf  ;;  %v1355_v36 = vsel %vm1224_vm2, %v1136_v32, -inf }
  0xdc   : > { %v1453_v42 = vrot.slane %v1452_v37, 4  ;;  %1681 = vst.msk [vmem:[%s2599_s10 + $0x140] sm:$0xff] %vm1224_vm2, %v1136_v32  ;;  %v928_v44 = vpop.f32.mrf.mxu2  ;;  %v1352_v1 = vmax.f32 %v1350_v33, %v1351_v30 }
  0xdd   : > { %v1557_v43 = vrot.slane %v1556_v38, 4  ;;  %v1024_v45 = vpop.f32.mrf.mxu3  ;;  %v2850_v46 = vadd.f32 %v2579_v2, %v928_v44  ;;  %v739_v48 = vpop.f32.mrf.mxu0  ;;  %v1249_v51 = vrot.slane %v1248_v39, 1 }
  0xde   : > { %v2853_v47 = vadd.f32 %v2579_v2, %v1024_v45  ;;  %v835_v49 = vpop.f32.mrf.mxu1  ;;  %v1454_v40 = vmax.f32 %v1452_v37, %v1453_v42  ;;  %v740_v52 = vadd.f32 %v2579_v2, %v739_v48  ;;  %v1353_v13 = vrot.slane %v1352_v1, 1  ;;  %v199_v45 = vld [vmem:[%s2445_s5 + $0xd8] sm:$0xff] }
  0xdf   : > { %v1558_v31 = vmax.f32 %v1556_v38, %v1557_v43  ;;  %v836_v41 = vadd.f32 %v2579_v2, %v835_v49  ;;  %v1168_v57 = vmax.f32 %v2850_v46, 0.0  ;;  %v1250_v60 = vmax.f32 %v1248_v39, %v1249_v51  ;;  %v295_v51 = vld [vmem:[%s2445_s5 + $0x3d8] sm:$0xff] }
  0xe0   : > { %v1200_v58 = vmax.f32 %v2853_v47, 0.0  ;;  %v1105_v61 = vmax.f32 %v740_v52, 0.0  ;;  %2138 = vmatmul.msk.f32.gmra.mxu0 %vm306_vm1, %v197_v50  ;;  %v1455_v0 = vrot.slane %v1454_v40, 2  ;;  %v1354_v27 = vmax.f32 %v1352_v1, %v1353_v13  ;;  %v263_v50 = vld [vmem:[%s2445_s5 + $0x2d8] sm:$0xff]  ;;  %v232_v13 = vld [vmem:[%s2445_s5 + $0x1e0] sm:$0xff] }
  0xe1   : > { %v1137_v62 = vmax.f32 %v836_v41, 0.0  ;;  %v1559_v63 = vrot.slane %v1558_v31, 2  ;;  %1713 = vst.msk [vmem:[%s2599_s10 + $0x240] sm:$0xff] %vm1224_vm2, %v1168_v57  ;;  %2170 = vmatmul.msk.f32.gmra.mxu1 %vm306_vm1, %v229_v53  ;;  %2202 = vmatmul.msk.f32.gmra.mxu2 %vm306_vm1, %v261_v56  ;;  %v1459_v52 = vsel %vm1224_vm2, %v1168_v57, -inf }
  0xe2   : > { %1745 = vst.msk [vmem:[%s2599_s10 + $0x340] sm:$0xff] %vm1224_vm2, %v1200_v58  ;;  %2234 = vmatmul.msk.f32.gmra.mxu3 %vm306_vm1, %v293_v59  ;;  %1803 = vrot.lane.b32.xlu0 %v1250_v60, %s2364_s11  ;;  %v1456_v54 = vmax.f32 %v1454_v40, %v1455_v0  ;;  %v1252_v26 = vsel %vm1224_vm2, %v1105_v61, -inf }
  0xe3   : > { %v1560_v3 = vmax.f32 %v1558_v31, %v1559_v63  ;;  %1650 = vst.msk [vmem:[%s2599_s10 + $0x48] sm:$0xff] %vm1224_vm2, %v1105_v61  ;;  %v1356_v28 = vsel %vm1224_vm2, %v1137_v62, -inf  ;;  %v1253_v48 = vmax.f32 %v1251_v35, %v1252_v26 }
  0xe4   : > { %1682 = vst.msk [vmem:[%s2599_s10 + $0x148] sm:$0xff] %vm1224_vm2, %v1137_v62  ;;  %v931_v4 = vpop.f32.mrf.mxu2  ;;  %v1457_v8 = vrot.slane %v1456_v54, 1  ;;  %v1357_v32 = vmax.f32 %v1355_v36, %v1356_v28  ;;  %v1563_v62 = vsel %vm1224_vm2, %v1200_v58, -inf }
  0xe5   : > { %v1027_v5 = vpop.f32.mrf.mxu3  ;;  %v1561_v7 = vrot.slane %v1560_v3, 1  ;;  %v932_v9 = vadd.f32 %v2579_v2, %v931_v4  ;;  %v742_v11 = vpop.f32.mrf.mxu0 }
  0xe6   : > { %v2882_v10 = vadd.f32 %v2579_v2, %v1027_v5  ;;  %v838_v12 = vpop.f32.mrf.mxu1  ;;  %v743_v14 = vadd.f32 %v2579_v2, %v742_v11  ;;  %v1458_v17 = vmax.f32 %v1456_v54, %v1457_v8 }
  0xe7   : > { %v839_v15 = vadd.f32 %v2579_v2, %v838_v12  ;;  %v1562_v55 = vmax.f32 %v1560_v3, %v1561_v7  ;;  %v1169_v19 = vmax.f32 %v932_v9, 0.0  ;;  %v200_v12 = vld [vmem:[%s2445_s5 + $0xe0] sm:$0xff] }
  0xe8   : > { %v1201_v24 = vmax.f32 %v2882_v10, 0.0  ;;  %v1106_v25 = vmax.f32 %v743_v14, 0.0  ;;  %1835 = vrot.lane.b32.xlu2 %v1458_v17, %s2364_s11  ;;  %2139 = vmatmul.msk.f32.gmra.mxu0 %vm306_vm1, %v198_v6  ;;  %v264_v17 = vld [vmem:[%s2445_s5 + $0x2e0] sm:$0xff] }
  0xe9   : > { %v1138_v16 = vmax.f32 %v839_v15, 0.0  ;;  %1851 = vrot.lane.b32.xlu1 %v1562_v55, %s2364_s11  ;;  %1714 = vst.msk [vmem:[%s2599_s10 + $0x248] sm:$0xff] %vm1224_vm2, %v1169_v19  ;;  %2171 = vmatmul.msk.f32.gmra.mxu1 %vm306_vm1, %v230_v18  ;;  %v1460_v41 = vsel %vm1224_vm2, %v1169_v19, -inf  ;;  %v296_v6 = vld [vmem:[%s2445_s5 + $0x3e0] sm:$0xff] }
  0xea   : > { %1746 = vst.msk [vmem:[%s2599_s10 + $0x348] sm:$0xff] %vm1224_vm2, %v1201_v24  ;;  %2203 = vmatmul.msk.f32.gmra.mxu2 %vm306_vm1, %v262_v22  ;;  %2235 = vmatmul.msk.f32.gmra.mxu3 %vm306_vm1, %v294_v23  ;;  %v1254_v43 = vsel %vm1224_vm2, %v1106_v25, -inf  ;;  %v1564_v46 = vsel %vm1224_vm2, %v1201_v24, -inf  ;;  %v1461_v63 = vmax.f32 %v1459_v52, %v1460_v41 }
  0xeb   : > { %1651 = vst.msk [vmem:[%s2599_s10 + $0x50] sm:$0xff] %vm1224_vm2, %v1106_v25  ;;  %1819 = vrot.lane.b32.xlu0 %v1354_v27, %s2364_s11  ;;  %v1358_v44 = vsel %vm1224_vm2, %v1138_v16, -inf  ;;  %v1255_v53 = vmax.f32 %v1253_v48, %v1254_v43  ;;  %v1565_v9 = vmax.f32 %v1563_v62, %v1564_v46 }
  0xec   : > { %1683 = vst.msk [vmem:[%s2599_s10 + $0x150] sm:$0xff] %vm1224_vm2, %v1138_v16  ;;  %v934_v33 = vpop.f32.mrf.mxu2  ;;  %v1359_v56 = vmax.f32 %v1357_v32, %v1358_v44  ;;  %v201_v32 = vld [vmem:[%s2445_s5 + $0xe8] sm:$0xff] }
  0xed   : > { %v1030_v34 = vpop.f32.mrf.mxu3  ;;  %v935_v37 = vadd.f32 %v2579_v2, %v934_v33  ;;  %v745_v39 = vpop.f32.mrf.mxu0 }
  0xee   : > { %v1031_v38 = vadd.f32 %v2579_v2, %v1030_v34  ;;  %v841_v42 = vpop.f32.mrf.mxu1  ;;  %v746_v20 = vadd.f32 %v2579_v2, %v745_v39 }
  0xef   : > { %v842_v29 = vadd.f32 %v2579_v2, %v841_v42  ;;  %v1170_v49 = vmax.f32 %v935_v37, 0.0 }
  0xf0   : > { %v1202_v30 = vmax.f32 %v1031_v38, 0.0  ;;  %v1107_v40 = vmax.f32 %v746_v20, 0.0  ;;  %2140 = vmatmul.msk.f32.gmra.mxu0 %vm306_vm1, %v199_v45 }
  0xf1   : > { %v1139_v31 = vmax.f32 %v842_v29, 0.0  ;;  %1715 = vst.msk [vmem:[%s2599_s10 + $0x250] sm:$0xff] %vm1224_vm2, %v1170_v49  ;;  %2172 = vmatmul.msk.f32.gmra.mxu1 %vm306_vm1, %v231_v21  ;;  %v1462_v0 = vsel %vm1224_vm2, %v1170_v49, -inf  ;;  %v233_v49 = vld [vmem:[%s2445_s5 + $0x1e8] sm:$0xff] }
  0xf2   : > { %1747 = vst.msk [vmem:[%s2599_s10 + $0x350] sm:$0xff] %vm1224_vm2, %v1202_v30  ;;  %v1256_v59 = vsel %vm1224_vm2, %v1107_v40, -inf  ;;  %2204 = vmatmul.msk.f32.gmra.mxu2 %vm306_vm1, %v263_v50  ;;  %2236 = vmatmul.msk.f32.gmra.mxu3 %vm306_vm1, %v295_v51  ;;  %v1566_v1 = vsel %vm1224_vm2, %v1202_v30, -inf  ;;  %v1463_v18 = vmax.f32 %v1461_v63, %v1462_v0  ;;  %v265_v30 = vld [vmem:[%s2445_s5 + $0x2e8] sm:$0xff] }
  0xf3   : > { %v1360_v60 = vsel %vm1224_vm2, %v1139_v31, -inf  ;;  %v1257_v57 = vmax.f32 %v1255_v53, %v1256_v59  ;;  %1652 = vst.msk [vmem:[%s2599_s10 + $0x58] sm:$0xff] %vm1224_vm2, %v1107_v40  ;;  %v1567_v19 = vmax.f32 %v1565_v9, %v1566_v1  ;;  %v297_v40 = vld [vmem:[%s2445_s5 + $0x3e8] sm:$0xff]  ;;  %v234_v9 = vld [vmem:[%s2445_s5 + $0x1f0] sm:$0xff] }
  0xf4   : > { %v1361_v61 = vmax.f32 %v1359_v56, %v1360_v60  ;;  %1684 = vst.msk [vmem:[%s2599_s10 + $0x158] sm:$0xff] %vm1224_vm2, %v1139_v31  ;;  %v937_v3 = vpop.f32.mrf.mxu2 }
  0xf5   : > { %v1033_v54 = vpop.f32.mrf.mxu3  ;;  %v1258_v4 = vrot.slane %v1257_v57, 4  ;;  %v938_v7 = vadd.f32 %v2579_v2, %v937_v3  ;;  %v748_v58 = vpop.f32.mrf.mxu0 }
  0xf6   : > { %v1362_v5 = vrot.slane %v1361_v61, 4  ;;  %v1034_v47 = vadd.f32 %v2579_v2, %v1033_v54  ;;  %v844_v8 = vpop.f32.mrf.mxu1  ;;  %v2951_v10 = vadd.f32 %v2579_v2, %v748_v58 }
  0xf7   : > { %v2954_v11 = vadd.f32 %v2579_v2, %v844_v8  ;;  %v1259_v14 = vmax.f32 %v1257_v57, %v1258_v4  ;;  %v1171_v15 = vmax.f32 %v938_v7, 0.0  ;;  %v202_v8 = vld [vmem:[%s2445_s5 + $0xf0] sm:$0xff] }
  0xf8   : > { %v1203_v55 = vmax.f32 %v1034_v47, 0.0  ;;  %v1108_v22 = vmax.f32 %v2951_v10, 0.0  ;;  %v1363_v24 = vmax.f32 %v1361_v61, %v1362_v5  ;;  %2141 = vmatmul.msk.f32.gmra.mxu0 %vm306_vm1, %v200_v12 }
  0xf9   : > { %v1140_v23 = vmax.f32 %v2954_v11, 0.0  ;;  %v1464_v25 = vsel %vm1224_vm2, %v1171_v15, -inf  ;;  %1716 = vst.msk [vmem:[%s2599_s10 + $0x258] sm:$0xff] %vm1224_vm2, %v1171_v15  ;;  %2173 = vmatmul.msk.f32.gmra.mxu1 %vm306_vm1, %v232_v13  ;;  %v1260_v27 = vrot.slane %v1259_v14, 2  ;;  %v266_v13 = vld [vmem:[%s2445_s5 + $0x2f0] sm:$0xff] }
  0xfa   : > { %v1568_v16 = vsel %vm1224_vm2, %v1203_v55, -inf  ;;  %v1465_v26 = vmax.f32 %v1463_v18, %v1464_v25  ;;  %1748 = vst.msk [vmem:[%s2599_s10 + $0x358] sm:$0xff] %vm1224_vm2, %v1203_v55  ;;  %2205 = vmatmul.msk.f32.gmra.mxu2 %vm306_vm1, %v264_v17  ;;  %2237 = vmatmul.msk.f32.gmra.mxu3 %vm306_vm1, %v296_v6  ;;  %v1364_v20 = vrot.slane %v1363_v24, 2  ;;  %v1264_v25 = vsel %vm1224_vm2, %v1108_v22, -inf }
  0xfb   : > { %v1569_v28 = vmax.f32 %v1567_v19, %v1568_v16  ;;  %1653 = vst.msk [vmem:[%s2599_s10 + $0x60] sm:$0xff] %vm1224_vm2, %v1108_v22  ;;  %v1261_v33 = vmax.f32 %v1259_v14, %v1260_v27  ;;  %v298_v14 = vld [vmem:[%s2445_s5 + $0x3f0] sm:$0xff]  ;;  %v1368_v16 = vsel %vm1224_vm2, %v1140_v23, -inf  ;;  %v3048_v27 = vld [vmem:[%s3782_s2] ss:$0 sm:$0xff] }
  0xfc   : > { %v1466_v34 = vrot.slane %v1465_v26, 4  ;;  %1685 = vst.msk [vmem:[%s2599_s10 + $0x160] sm:$0xff] %vm1224_vm2, %v1140_v23  ;;  %v940_v36 = vpop.f32.mrf.mxu2  ;;  %v1365_v59 = vmax.f32 %v1363_v24, %v1364_v20  ;;  %v299_v20 = vld [vmem:[%s2445_s5 + $0x3f8] sm:$0xff] }
  0xfd   : > { %v1570_v35 = vrot.slane %v1569_v28, 4  ;;  %v1036_v37 = vpop.f32.mrf.mxu3  ;;  %v2981_v38 = vadd.f32 %v2579_v2, %v940_v36  ;;  %v751_v42 = vpop.f32.mrf.mxu0  ;;  %v1262_v44 = vrot.slane %v1261_v33, 1  ;;  %v235_v36 = vld [vmem:[%s2445_s5 + $0x1f8] sm:$0xff] }
  0xfe   : > { %v2984_v39 = vadd.f32 %v2579_v2, %v1036_v37  ;;  %v847_v43 = vpop.f32.mrf.mxu1  ;;  %v1467_v29 = vmax.f32 %v1465_v26, %v1466_v34  ;;  %v752_v21 = vadd.f32 %v2579_v2, %v751_v42  ;;  %v1366_v4 = vrot.slane %v1365_v59, 1 }
  0xff   : > { %v1571_v45 = vmax.f32 %v1569_v28, %v1570_v35  ;;  %v848_v48 = vadd.f32 %v2579_v2, %v847_v43  ;;  %v1172_v50 = vmax.f32 %v2981_v38, 0.0  ;;  %v1263_v31 = vmax.f32 %v1261_v33, %v1262_v44  ;;  %v203_v35 = vld [vmem:[%s2445_s5 + $0xf8] sm:$0xff] }
 0x100   : > { %v1204_v51 = vmax.f32 %v2984_v39, 0.0  ;;  %v1109_v52 = vmax.f32 %v752_v21, 0.0  ;;  %v1468_v56 = vrot.slane %v1467_v29, 2  ;;  %2142 = vmatmul.msk.f32.gmra.mxu0 %vm306_vm1, %v201_v32  ;;  %v267_v44 = vld [vmem:[%s2445_s5 + $0x2f8] sm:$0xff]  ;;  %s2316_s5 = scalar_lea.hbm %s2315_s4, 1024 }
 0x101   : > { %v1141_v41 = vmax.f32 %v848_v48, 0.0  ;;  %v1572_v53 = vrot.slane %v1571_v45, 2  ;;  %1717 = vst.msk [vmem:[%s2599_s10 + $0x260] sm:$0xff] %vm1224_vm2, %v1172_v50  ;;  %2174 = vmatmul.msk.f32.gmra.mxu1 %vm306_vm1, %v233_v49  ;;  %1805 = vrot.lane.b32.xlu1 %v1263_v31, %s2364_s11  ;;  %v1472_v48 = vsel %vm1224_vm2, %v1172_v50, -inf  ;;  %p2317_p11 = scmp.ne.s32.totalorder %s2315_s4, %s2316_s5  ;;  %p2322_p1 = scmp.lt.s32.totalorder %s2320_s9, %s2316_s5 }
 0x102   : > { %1749 = vst.msk [vmem:[%s2599_s10 + $0x360] sm:$0xff] %vm1224_vm2, %v1204_v51  ;;  %2206 = vmatmul.msk.f32.gmra.mxu2 %vm306_vm1, %v265_v30  ;;  %2238 = vmatmul.msk.f32.gmra.mxu3 %vm306_vm1, %v297_v40  ;;  %v1469_v46 = vmax.f32 %v1467_v29, %v1468_v56  ;;  %v1265_v6 = vsel %vm1224_vm2, %v1109_v52, -inf }
 0x103   : > { %v1573_v60 = vmax.f32 %v1571_v45, %v1572_v53  ;;  %1654 = vst.msk [vmem:[%s2599_s10 + $0x68] sm:$0xff] %vm1224_vm2, %v1109_v52  ;;  %v1369_v18 = vsel %vm1224_vm2, %v1141_v41, -inf  ;;  %v1266_v37 = vmax.f32 %v1264_v25, %v1265_v6  ;;  %p2318_p12 = pnand %p2317_p11, %p2425_p5  ;;  %p2323_p2 = por %p2322_p1, %p2321_p0 }
 0x104   : > { %1686 = vst.msk [vmem:[%s2599_s10 + $0x168] sm:$0xff] %vm1224_vm2, %v1141_v41  ;;  %v943_v57 = vpop.f32.mrf.mxu2  ;;  %v1470_v63 = vrot.slane %v1469_v46, 1  ;;  %v1370_v42 = vmax.f32 %v1368_v16, %v1369_v18  ;;  %v1576_v41 = vsel %vm1224_vm2, %v1204_v51, -inf }
 0x105   : > { %v1039_v61 = vpop.f32.mrf.mxu3  ;;  %v1574_v62 = vrot.slane %v1573_v60, 1  ;;  %v944_v0 = vadd.f32 %v2579_v2, %v943_v57  ;;  %v754_v3 = vpop.f32.mrf.mxu0  ;;  %p2319_p13 = pneg %p2318_p12 }
 0x106   : > { %v3013_v1 = vadd.f32 %v2579_v2, %v1039_v61  ;;  %v850_v54 = vpop.f32.mrf.mxu1  ;;  %v755_v5 = vadd.f32 %v2579_v2, %v754_v3  ;;  %v1471_v58 = vmax.f32 %v1469_v46, %v1470_v63 }
 0x107   : > { %v851_v7 = vadd.f32 %v2579_v2, %v850_v54  ;;  %v1575_v47 = vmax.f32 %v1573_v60, %v1574_v62  ;;  %v1173_v12 = vmax.f32 %v944_v0, 0.0  ;;  %v1367_v2 = vmax.f32 %v1365_v59, %v1366_v4  ;;  %p2324_p3 = pnand %p2323_p2, %p2319_p13 }
 0x108   : > { %v1205_v15 = vmax.f32 %v3013_v1, 0.0  ;;  %v1110_v55 = vmax.f32 %v755_v5, 0.0  ;;  %1837 = vrot.lane.b32.xlu0 %v1471_v58, %s2364_s11  ;;  %2143 = vmatmul.msk.f32.gmra.mxu0 %vm306_vm1, %v202_v8 }
 0x109   : > { %v1142_v17 = vmax.f32 %v851_v7, 0.0  ;;  %1853 = vrot.lane.b32.xlu2 %v1575_v47, %s2364_s11  ;;  %1718 = vst.msk [vmem:[%s2599_s10 + $0x268] sm:$0xff] %vm1224_vm2, %v1173_v12  ;;  %2175 = vmatmul.msk.f32.gmra.mxu1 %vm306_vm1, %v234_v9  ;;  %v1473_v32 = vsel %vm1224_vm2, %v1173_v12, -inf }
 0x10a   : > { %1750 = vst.msk [vmem:[%s2599_s10 + $0x368] sm:$0xff] %vm1224_vm2, %v1205_v15  ;;  %2207 = vmatmul.msk.f32.gmra.mxu2 %vm306_vm1, %v266_v13  ;;  %2239 = vmatmul.msk.f32.gmra.mxu3 %vm306_vm1, %v298_v14  ;;  %v1267_v10 = vsel %vm1224_vm2, %v1110_v55, -inf  ;;  %v1577_v38 = vsel %vm1224_vm2, %v1205_v15, -inf  ;;  %v1474_v53 = vmax.f32 %v1472_v48, %v1473_v32 }
 0x10b   : > { %1655 = vst.msk [vmem:[%s2599_s10 + $0x70] sm:$0xff] %vm1224_vm2, %v1110_v55  ;;  %1821 = vrot.lane.b32.xlu1 %v1367_v2, %s2364_s11  ;;  %v1371_v22 = vsel %vm1224_vm2, %v1142_v17, -inf  ;;  %v1268_v49 = vmax.f32 %v1266_v37, %v1267_v10  ;;  %v1578_v1 = vmax.f32 %v1576_v41, %v1577_v38 }
 0x10c   : > { %1687 = vst.msk [vmem:[%s2599_s10 + $0x170] sm:$0xff] %vm1224_vm2, %v1142_v17  ;;  %v946_v19 = vpop.f32.mrf.mxu2  ;;  %v1372_v30 = vmax.f32 %v1370_v42, %v1371_v22 }
 0x10d   : > { %v1042_v24 = vpop.f32.mrf.mxu3  ;;  %v947_v26 = vadd.f32 %v3048_v27, %v946_v19  ;;  %v757_v33 = vpop.f32.mrf.mxu0 }
 0x10e   : > { %v1043_v28 = vadd.f32 %v3048_v27, %v1042_v24  ;;  %v853_v34 = vpop.f32.mrf.mxu1  ;;  %v758_v11 = vadd.f32 %v3048_v27, %v757_v33 }
 0x10f   : > { %v854_v23 = vadd.f32 %v3048_v27, %v853_v34  ;;  %v1174_v43 = vmax.f32 %v947_v26, 0.0 }
 0x110   : > { %v1206_v29 = vmax.f32 %v1043_v28, 0.0  ;;  %v1111_v45 = vmax.f32 %v758_v11, 0.0  ;;  %2144 = vmatmul.msk.f32.gmra.mxu0 %vm306_vm1, %v203_v35 }
 0x111   : > { %v1143_v21 = vmax.f32 %v854_v23, 0.0  ;;  %1719 = vst.msk [vmem:[%s2599_s10 + $0x270] sm:$0xff] %vm1224_vm2, %v1174_v43  ;;  %2176 = vmatmul.msk.f32.gmra.mxu1 %vm306_vm1, %v235_v36  ;;  %v1475_v56 = vsel %vm1224_vm2, %v1174_v43, -inf }
 0x112   : > { %1751 = vst.msk [vmem:[%s2599_s10 + $0x370] sm:$0xff] %vm1224_vm2, %v1206_v29  ;;  %v1269_v40 = vsel %vm1224_vm2, %v1111_v45, -inf  ;;  %2208 = vmatmul.msk.f32.gmra.mxu2 %vm306_vm1, %v267_v44  ;;  %2240 = vmatmul.msk.f32.gmra.mxu3 %vm306_vm1, %v299_v20  ;;  %v1579_v59 = vsel %vm1224_vm2, %v1206_v29, -inf  ;;  %v1476_v47 = vmax.f32 %v1474_v53, %v1475_v56 }
 0x113   : > { %v1373_v31 = vsel %vm1224_vm2, %v1143_v21, -inf  ;;  %v1270_v50 = vmax.f32 %v1268_v49, %v1269_v40  ;;  %1656 = vst.msk [vmem:[%s2599_s10 + $0x78] sm:$0xff] %vm1224_vm2, %v1111_v45  ;;  %v1580_v58 = vmax.f32 %v1578_v1, %v1579_v59 }
 0x114   : > { %v1374_v52 = vmax.f32 %v1372_v30, %v1373_v31  ;;  %1688 = vst.msk [vmem:[%s2599_s10 + $0x178] sm:$0xff] %vm1224_vm2, %v1143_v21  ;;  %v949_v60 = vpop.f32.mrf.mxu2 }
 0x115   : > { %v1045_v46 = vpop.f32.mrf.mxu3  ;;  %v1271_v57 = vrot.slane %v1270_v50, 4  ;;  %v950_v62 = vadd.f32 %v3048_v27, %v949_v60  ;;  %v760_v0 = vpop.f32.mrf.mxu0 }
 0x116   : > { %v1375_v61 = vrot.slane %v1374_v52, 4  ;;  %v1046_v63 = vadd.f32 %v3048_v27, %v1045_v46  ;;  %v856_v39 = vpop.f32.mrf.mxu1  ;;  %v3087_v51 = vadd.f32 %v3048_v27, %v760_v0 }
 0x117   : > { %v3090_v3 = vadd.f32 %v3048_v27, %v856_v39  ;;  %v1272_v54 = vmax.f32 %v1270_v50, %v1271_v57  ;;  %v1175_v5 = vmax.f32 %v950_v62, 0.0 }
 0x118   : > { %v1376_v4 = vmax.f32 %v1374_v52, %v1375_v61  ;;  %v1207_v7 = vmax.f32 %v1046_v63, 0.0  ;;  %v1112_v8 = vmax.f32 %v3087_v51, 0.0 }
 0x119   : > { %v1144_v9 = vmax.f32 %v3090_v3, 0.0  ;;  %v1477_v12 = vsel %vm1224_vm2, %v1175_v5, -inf  ;;  %1720 = vst.msk [vmem:[%s2599_s10 + $0x278] sm:$0xff] %vm1224_vm2, %v1175_v5  ;;  %v1273_v15 = vrot.slane %v1272_v54, 2 }
 0x11a   : > { %v1581_v13 = vsel %vm1224_vm2, %v1207_v7, -inf  ;;  %v1377_v14 = vrot.slane %v1376_v4, 2  ;;  %v1478_v55 = vmax.f32 %v1476_v47, %v1477_v12  ;;  %1752 = vst.msk [vmem:[%s2599_s10 + $0x378] sm:$0xff] %vm1224_vm2, %v1207_v7  ;;  %v1277_v7 = vsel %vm1224_vm2, %v1112_v8, -inf }
 0x11b   : > { %v1582_v17 = vmax.f32 %v1580_v58, %v1581_v13  ;;  %1657 = vst.msk [vmem:[%s2599_s10 + $0x80] sm:$0xff] %vm1224_vm2, %v1112_v8  ;;  %v1274_v6 = vmax.f32 %v1272_v54, %v1273_v15  ;;  %v1381_v47 = vsel %vm1224_vm2, %v1144_v9, -inf }
 0x11c   : > { %v1378_v2 = vmax.f32 %v1376_v4, %v1377_v14  ;;  %v1479_v18 = vrot.slane %v1478_v55, 4  ;;  %1689 = vst.msk [vmem:[%s2599_s10 + $0x180] sm:$0xff] %vm1224_vm2, %v1144_v9  ;;  %v952_v24 = vpop.f32.mrf.mxu2  ;;  %v1818_v28 = vpop.permute.xlu2 %1817 }
 0x11d   : > { %v1583_v19 = vrot.slane %v1582_v17, 4  ;;  %v1048_v25 = vpop.f32.mrf.mxu3  ;;  %v3109_v16 = vadd.f32 %v3048_v27, %v952_v24  ;;  %v763_v33 = vpop.f32.mrf.mxu0  ;;  %v1275_v10 = vrot.slane %v1274_v6, 1  ;;  %1930 = vst.msk [vmem:[%s2599_s10 + $0x100] sm:$0xff] %vm1897_vm3, %v1818_v28 }
 0x11e   : > { %v3112_v26 = vadd.f32 %v3048_v27, %v1048_v25  ;;  %v1379_v34 = vrot.slane %v1378_v2, 1  ;;  %v1480_v22 = vmax.f32 %v1478_v55, %v1479_v18  ;;  %v764_v23 = vadd.f32 %v3048_v27, %v763_v33  ;;  %v859_v35 = vpop.f32.mrf.mxu1  ;;  %1931 = vst.msk [vmem:[%s2599_s10 + $0x108] sm:$0xff] %vm1897_vm3, %v1818_v28 }
 0x11f   : > { %v1584_v11 = vmax.f32 %v1582_v17, %v1583_v19  ;;  %v1176_v36 = vmax.f32 %v3109_v16, 0.0  ;;  %v860_v42 = vadd.f32 %v3048_v27, %v859_v35  ;;  %1932 = vst.msk [vmem:[%s2599_s10 + $0x110] sm:$0xff] %vm1897_vm3, %v1818_v28  ;;  %v1276_v20 = vmax.f32 %v1274_v6, %v1275_v10 }
 0x120   : > { %v1208_v37 = vmax.f32 %v3112_v26, 0.0  ;;  %v1380_v43 = vmax.f32 %v1378_v2, %v1379_v34  ;;  %v1113_v44 = vmax.f32 %v764_v23, 0.0  ;;  %v1481_v45 = vrot.slane %v1480_v22, 2  ;;  %1933 = vst.msk [vmem:[%s2599_s10 + $0x118] sm:$0xff] %vm1897_vm3, %v1818_v28 }
 0x121   : > { %v1585_v29 = vrot.slane %v1584_v11, 2  ;;  %1721 = vst.msk [vmem:[%s2599_s10 + $0x280] sm:$0xff] %vm1224_vm2, %v1176_v36  ;;  %v1145_v21 = vmax.f32 %v860_v42, 0.0  ;;  %1807 = vrot.lane.b32.xlu1 %v1276_v20, %s2364_s11  ;;  %v1485_v3 = vsel %vm1224_vm2, %v1176_v36, -inf }
 0x122   : > { %1823 = vrot.lane.b32.xlu2 %v1380_v43, %s2364_s11  ;;  %1753 = vst.msk [vmem:[%s2599_s10 + $0x380] sm:$0xff] %vm1224_vm2, %v1208_v37  ;;  %v1482_v32 = vmax.f32 %v1480_v22, %v1481_v45  ;;  %v1278_v63 = vsel %vm1224_vm2, %v1113_v44, -inf  ;;  %v1589_v33 = vsel %vm1224_vm2, %v1208_v37, -inf }
 0x123   : > { %v1586_v48 = vmax.f32 %v1584_v11, %v1585_v29  ;;  %1658 = vst.msk [vmem:[%s2599_s10 + $0x88] sm:$0xff] %vm1224_vm2, %v1113_v44  ;;  %v1382_v1 = vsel %vm1224_vm2, %v1145_v21, -inf  ;;  %v1279_v14 = vmax.f32 %v1277_v7, %v1278_v63 }
 0x124   : > { %v955_v49 = vpop.f32.mrf.mxu2  ;;  %v1483_v31 = vrot.slane %v1482_v32, 1  ;;  %1690 = vst.msk [vmem:[%s2599_s10 + $0x188] sm:$0xff] %vm1224_vm2, %v1145_v21  ;;  %v1383_v17 = vmax.f32 %v1381_v47, %v1382_v1 }
 0x125   : > { %v1051_v30 = vpop.f32.mrf.mxu3  ;;  %v1587_v40 = vrot.slane %v1586_v48, 1  ;;  %v956_v38 = vadd.f32 %v3048_v27, %v955_v49  ;;  %v766_v52 = vpop.f32.mrf.mxu0 }
 0x126   : > { %v1052_v50 = vadd.f32 %v3048_v27, %v1051_v30  ;;  %v767_v41 = vadd.f32 %v3048_v27, %v766_v52  ;;  %v862_v53 = vpop.f32.mrf.mxu1  ;;  %v1484_v61 = vmax.f32 %v1482_v32, %v1483_v31 }
 0x127   : > { %v1588_v56 = vmax.f32 %v1586_v48, %v1587_v40  ;;  %v1177_v59 = vmax.f32 %v956_v38, 0.0  ;;  %v863_v60 = vadd.f32 %v3048_v27, %v862_v53 }
 0x128   : > { %v1209_v46 = vmax.f32 %v1052_v50, 0.0  ;;  %v1114_v57 = vmax.f32 %v767_v41, 0.0 }
 0x129   : > { %1855 = vrot.lane.b32.xlu0 %v1588_v56, %s2364_s11  ;;  %1722 = vst.msk [vmem:[%s2599_s10 + $0x288] sm:$0xff] %vm1224_vm2, %v1177_v59  ;;  %v1146_v62 = vmax.f32 %v863_v60, 0.0  ;;  %1839 = vrot.lane.b32.xlu1 %v1484_v61, %s2364_s11  ;;  %v1486_v9 = vsel %vm1224_vm2, %v1177_v59, -inf }
 0x12a   : > { %1754 = vst.msk [vmem:[%s2599_s10 + $0x388] sm:$0xff] %vm1224_vm2, %v1209_v46  ;;  %v1280_v58 = vsel %vm1224_vm2, %v1114_v57, -inf  ;;  %v1590_v25 = vsel %vm1224_vm2, %v1209_v46, -inf  ;;  %v1487_v34 = vmax.f32 %v1485_v3, %v1486_v9 }
 0x12b   : > { %1659 = vst.msk [vmem:[%s2599_s10 + $0x90] sm:$0xff] %vm1224_vm2, %v1114_v57  ;;  %v1384_v15 = vsel %vm1224_vm2, %v1146_v62, -inf  ;;  %v1281_v6 = vmax.f32 %v1279_v14, %v1280_v58  ;;  %v1591_v37 = vmax.f32 %v1589_v33, %v1590_v25 }
 0x12c   : > { %1691 = vst.msk [vmem:[%s2599_s10 + $0x190] sm:$0xff] %vm1224_vm2, %v1146_v62  ;;  %v958_v0 = vpop.f32.mrf.mxu2  ;;  %v1385_v19 = vmax.f32 %v1383_v17, %v1384_v15 }
 0x12d   : > { %v1054_v39 = vpop.f32.mrf.mxu3  ;;  %v959_v54 = vadd.f32 %v3048_v27, %v958_v0  ;;  %v769_v5 = vpop.f32.mrf.mxu0 }
 0x12e   : > { %v1055_v4 = vadd.f32 %v3048_v27, %v1054_v39  ;;  %v770_v12 = vadd.f32 %v3048_v27, %v769_v5  ;;  %v865_v13 = vpop.f32.mrf.mxu1 }
 0x12f   : > { %v1178_v55 = vmax.f32 %v959_v54, 0.0  ;;  %v866_v51 = vadd.f32 %v3048_v27, %v865_v13 }
 0x130   : > { %v1210_v2 = vmax.f32 %v1055_v4, 0.0  ;;  %v1115_v8 = vmax.f32 %v770_v12, 0.0 }
 0x131   : > { %1723 = vst.msk [vmem:[%s2599_s10 + $0x290] sm:$0xff] %vm1224_vm2, %v1178_v55  ;;  %v1147_v18 = vmax.f32 %v866_v51, 0.0  ;;  %v1488_v10 = vsel %vm1224_vm2, %v1178_v55, -inf }
 0x132   : > { %1755 = vst.msk [vmem:[%s2599_s10 + $0x390] sm:$0xff] %vm1224_vm2, %v1210_v2  ;;  %v1282_v24 = vsel %vm1224_vm2, %v1115_v8, -inf  ;;  %v1592_v35 = vsel %vm1224_vm2, %v1210_v2, -inf  ;;  %v1489_v30 = vmax.f32 %v1487_v34, %v1488_v10 }
 0x133   : > { %v1283_v16 = vmax.f32 %v1281_v6, %v1282_v24  ;;  %1660 = vst.msk [vmem:[%s2599_s10 + $0x98] sm:$0xff] %vm1224_vm2, %v1115_v8  ;;  %v1386_v28 = vsel %vm1224_vm2, %v1147_v18, -inf  ;;  %v1802_v26 = vpop.permute.xlu0 %1801  ;;  %v1593_v40 = vmax.f32 %v1591_v37, %v1592_v35 }
 0x134   : > { %v1387_v22 = vmax.f32 %v1385_v19, %v1386_v28  ;;  %1692 = vst.msk [vmem:[%s2599_s10 + $0x198] sm:$0xff] %vm1224_vm2, %v1147_v18  ;;  %v961_v11 = vpop.f32.mrf.mxu2 }
 0x135   : > { %v1057_v23 = vpop.f32.mrf.mxu3  ;;  %v1284_v36 = vrot.slane %v1283_v16, 4  ;;  %v962_v42 = vadd.f32 %v3048_v27, %v961_v11  ;;  %v772_v44 = vpop.f32.mrf.mxu0  ;;  %1898 = vst.msk [vmem:[%s2599_s10] sm:$0xff] %vm1897_vm3, %v1802_v26 }
 0x136   : > { %v1058_v43 = vadd.f32 %v3048_v27, %v1057_v23  ;;  %v1388_v20 = vrot.slane %v1387_v22, 4  ;;  %v3189_v29 = vadd.f32 %v3048_v27, %v772_v44  ;;  %v868_v45 = vpop.f32.mrf.mxu1  ;;  %1899 = vst.msk [vmem:[%s2599_s10 + $0x8] sm:$0xff] %vm1897_vm3, %v1802_v26 }
 0x137   : > { %v1285_v21 = vmax.f32 %v1283_v16, %v1284_v36  ;;  %v1179_v48 = vmax.f32 %v962_v42, 0.0  ;;  %v3194_v49 = vadd.f32 %v3048_v27, %v868_v45  ;;  %1900 = vst.msk [vmem:[%s2599_s10 + $0x10] sm:$0xff] %vm1897_vm3, %v1802_v26 }
 0x138   : > { %v1211_v32 = vmax.f32 %v1058_v43, 0.0  ;;  %v1389_v31 = vmax.f32 %v1387_v22, %v1388_v20  ;;  %v1116_v38 = vmax.f32 %v3189_v29, 0.0  ;;  %1901 = vst.msk [vmem:[%s2599_s10 + $0x18] sm:$0xff] %vm1897_vm3, %v1802_v26 }
 0x139   : > { %v1490_v50 = vsel %vm1224_vm2, %v1179_v48, -inf  ;;  %1724 = vst.msk [vmem:[%s2599_s10 + $0x298] sm:$0xff] %vm1224_vm2, %v1179_v48  ;;  %v1148_v41 = vmax.f32 %v3194_v49, 0.0  ;;  %v1286_v53 = vrot.slane %v1285_v21, 2 }
 0x13a   : > { %v1594_v52 = vsel %vm1224_vm2, %v1211_v32, -inf  ;;  %v1491_v56 = vmax.f32 %v1489_v30, %v1490_v50  ;;  %1756 = vst.msk [vmem:[%s2599_s10 + $0x398] sm:$0xff] %vm1224_vm2, %v1211_v32  ;;  %v1390_v60 = vrot.slane %v1389_v31, 2  ;;  %v1834_v46 = vpop.permute.xlu1 %1833 }
 0x13b   : > { %v1595_v59 = vmax.f32 %v1593_v40, %v1594_v52  ;;  %v1287_v57 = vmax.f32 %v1285_v21, %v1286_v53  ;;  %1661 = vst.msk [vmem:[%s2599_s10 + $0xa0] sm:$0xff] %vm1224_vm2, %v1116_v38  ;;  %v1290_v52 = vsel %vm1224_vm2, %v1116_v38, -inf }
 0x13c   : > { %v1492_v61 = vrot.slane %v1491_v56, 4  ;;  %v964_v63 = vpop.f32.mrf.mxu2  ;;  %v1391_v39 = vmax.f32 %v1389_v31, %v1390_v60  ;;  %1693 = vst.msk [vmem:[%s2599_s10 + $0x1a0] sm:$0xff] %vm1224_vm2, %v1148_v41  ;;  %v1850_v8 = vpop.permute.xlu0 %1849 }
 0x13d   : > { %v1596_v62 = vrot.slane %v1595_v59, 4  ;;  %v1060_v0 = vpop.f32.mrf.mxu3  ;;  %v3217_v1 = vadd.f32 %v3048_v27, %v964_v63  ;;  %v775_v4 = vpop.f32.mrf.mxu0  ;;  %v1288_v5 = vrot.slane %v1287_v57, 1  ;;  %1962 = vst.msk [vmem:[%s2599_s10 + $0x200] sm:$0xff] %vm1897_vm3, %v1834_v46 }
 0x13e   : > { %v1061_v54 = vadd.f32 %v3048_v27, %v1060_v0  ;;  %v1493_v7 = vmax.f32 %v1491_v56, %v1492_v61  ;;  %v871_v58 = vpop.f32.mrf.mxu1  ;;  %v1392_v12 = vrot.slane %v1391_v39, 1  ;;  %1963 = vst.msk [vmem:[%s2599_s10 + $0x208] sm:$0xff] %vm1897_vm3, %v1834_v46  ;;  %v776_v55 = vadd.f32 %v3048_v27, %v775_v4 }
 0x13f   : > { %v1597_v47 = vmax.f32 %v1595_v59, %v1596_v62  ;;  %v1180_v13 = vmax.f32 %v3217_v1, 0.0  ;;  %v1289_v15 = vmax.f32 %v1287_v57, %v1288_v5  ;;  %1964 = vst.msk [vmem:[%s2599_s10 + $0x210] sm:$0xff] %vm1897_vm3, %v1834_v46  ;;  %v872_v3 = vadd.f32 %v3048_v27, %v871_v58 }
 0x140   : > { %v1212_v14 = vmax.f32 %v1061_v54, 0.0  ;;  %v1393_v51 = vmax.f32 %v1391_v39, %v1392_v12  ;;  %v1494_v2 = vrot.slane %v1493_v7, 2  ;;  %1965 = vst.msk [vmem:[%s2599_s10 + $0x218] sm:$0xff] %vm1897_vm3, %v1834_v46  ;;  %v1117_v18 = vmax.f32 %v776_v55, 0.0 }
 0x141   : > { %v1598_v17 = vrot.slane %v1597_v47, 2  ;;  %1809 = vrot.lane.b32.xlu2 %v1289_v15, %s2364_s11  ;;  %1725 = vst.msk [vmem:[%s2599_s10 + $0x2a0] sm:$0xff] %vm1224_vm2, %v1180_v13  ;;  %v1149_v28 = vmax.f32 %v872_v3, 0.0  ;;  %v1394_v46 = vsel %vm1224_vm2, %v1148_v41, -inf  ;;  %v1498_v49 = vsel %vm1224_vm2, %v1180_v13, -inf }
 0x142   : > { %1825 = vrot.lane.b32.xlu0 %v1393_v51, %s2364_s11  ;;  %v1495_v6 = vmax.f32 %v1493_v7, %v1494_v2  ;;  %1757 = vst.msk [vmem:[%s2599_s10 + $0x3a0] sm:$0xff] %vm1224_vm2, %v1212_v14  ;;  %v1836_v23 = vpop.permute.xlu2 %1835  ;;  %v1602_v26 = vsel %vm1224_vm2, %v1212_v14, -inf  ;;  %v1291_v21 = vsel %vm1224_vm2, %v1117_v18, -inf }
 0x143   : > { %v1599_v9 = vmax.f32 %v1597_v47, %v1598_v17  ;;  %1994 = vst.msk [vmem:[%s2599_s10 + $0x300] sm:$0xff] %vm1897_vm3, %v1850_v8  ;;  %v1395_v30 = vsel %vm1224_vm2, %v1149_v28, -inf  ;;  %v1292_v57 = vmax.f32 %v1290_v52, %v1291_v21 }
 0x144   : > { %v967_v19 = vpop.f32.mrf.mxu2  ;;  %v1496_v16 = vrot.slane %v1495_v6, 1  ;;  %1995 = vst.msk [vmem:[%s2599_s10 + $0x308] sm:$0xff] %vm1897_vm3, %v1850_v8  ;;  %v1396_v61 = vmax.f32 %v1394_v46, %v1395_v30 }
 0x145   : > { %v1063_v24 = vpop.f32.mrf.mxu3  ;;  %v1600_v25 = vrot.slane %v1599_v9, 1  ;;  %v778_v34 = vpop.f32.mrf.mxu0  ;;  %1996 = vst.msk [vmem:[%s2599_s10 + $0x310] sm:$0xff] %vm1897_vm3, %v1850_v8  ;;  %v968_v43 = vadd.f32 %v3048_v27, %v967_v19 }
 0x146   : > { %v1064_v33 = vadd.f32 %v3048_v27, %v1063_v24  ;;  %v779_v10 = vadd.f32 %v3048_v27, %v778_v34  ;;  %v874_v22 = vpop.f32.mrf.mxu1  ;;  %1997 = vst.msk [vmem:[%s2599_s10 + $0x318] sm:$0xff] %vm1897_vm3, %v1850_v8  ;;  %v1497_v42 = vmax.f32 %v1495_v6, %v1496_v16 }
 0x147   : > { %v1601_v11 = vmax.f32 %v1599_v9, %v1600_v25  ;;  %v875_v36 = vadd.f32 %v3048_v27, %v874_v22  ;;  %1662 = vst.msk [vmem:[%s2599_s10 + $0xa8] sm:$0xff] %vm1224_vm2, %v1117_v18  ;;  %v1181_v48 = vmax.f32 %v968_v43, 0.0 }
 0x148   : > { %v1213_v35 = vmax.f32 %v1064_v33, 0.0  ;;  %1694 = vst.msk [vmem:[%s2599_s10 + $0x1a8] sm:$0xff] %vm1224_vm2, %v1149_v28  ;;  %v1118_v20 = vmax.f32 %v779_v10, 0.0 }
 0x149   : > { %1857 = vrot.lane.b32.xlu1 %v1601_v11, %s2364_s11  ;;  %1841 = vrot.lane.b32.xlu2 %v1497_v42, %s2364_s11  ;;  %1966 = vst.msk [vmem:[%s2599_s10 + $0x220] sm:$0xff] %vm1897_vm3, %v1836_v23  ;;  %v1150_v45 = vmax.f32 %v875_v36, 0.0  ;;  %v1499_v41 = vsel %vm1224_vm2, %v1181_v48, -inf }
 0x14a   : > { %v1603_v44 = vsel %vm1224_vm2, %v1213_v35, -inf  ;;  %1967 = vst.msk [vmem:[%s2599_s10 + $0x228] sm:$0xff] %vm1897_vm3, %v1836_v23  ;;  %v1293_v53 = vsel %vm1224_vm2, %v1118_v20, -inf  ;;  %v1500_v12 = vmax.f32 %v1498_v49, %v1499_v41 }
 0x14b   : > { %v1604_v37 = vmax.f32 %v1602_v26, %v1603_v44  ;;  %1968 = vst.msk [vmem:[%s2599_s10 + $0x230] sm:$0xff] %vm1897_vm3, %v1836_v23  ;;  %v1397_v29 = vsel %vm1224_vm2, %v1150_v45, -inf  ;;  %v1294_v39 = vmax.f32 %v1292_v57, %v1293_v53 }
 0x14c   : > { %v970_v32 = vpop.f32.mrf.mxu2  ;;  %1969 = vst.msk [vmem:[%s2599_s10 + $0x238] sm:$0xff] %vm1897_vm3, %v1836_v23  ;;  %v1398_v4 = vmax.f32 %v1396_v61, %v1397_v29 }
 0x14d   : > { %v971_v40 = vadd.f32 %v3048_v27, %v970_v32  ;;  %v1066_v31 = vpop.f32.mrf.mxu3  ;;  %v781_v50 = vpop.f32.mrf.mxu0  ;;  %1726 = vst.msk [vmem:[%s2599_s10 + $0x2a8] sm:$0xff] %vm1224_vm2, %v1181_v48 }
 0x14e   : > { %v1067_v56 = vadd.f32 %v3048_v27, %v1066_v31  ;;  %v782_v59 = vadd.f32 %v3048_v27, %v781_v50  ;;  %v877_v60 = vpop.f32.mrf.mxu1  ;;  %1758 = vst.msk [vmem:[%s2599_s10 + $0x3a8] sm:$0xff] %vm1224_vm2, %v1213_v35 }
 0x14f   : > { %v878_v38 = vadd.f32 %v3048_v27, %v877_v60  ;;  %1663 = vst.msk [vmem:[%s2599_s10 + $0xb0] sm:$0xff] %vm1224_vm2, %v1118_v20  ;;  %v1182_v62 = vmax.f32 %v971_v40, 0.0 }
 0x150   : > { %v1214_v63 = vmax.f32 %v1067_v56, 0.0  ;;  %v1119_v0 = vmax.f32 %v782_v59, 0.0  ;;  %1695 = vst.msk [vmem:[%s2599_s10 + $0x1b0] sm:$0xff] %vm1224_vm2, %v1150_v45 }
 0x151   : > { %v1151_v54 = vmax.f32 %v878_v38, 0.0  ;;  %1727 = vst.msk [vmem:[%s2599_s10 + $0x2b0] sm:$0xff] %vm1224_vm2, %v1182_v62  ;;  %v1501_v55 = vsel %vm1224_vm2, %v1182_v62, -inf }
 0x152   : > { %v1605_v5 = vsel %vm1224_vm2, %v1214_v63, -inf  ;;  %v1295_v7 = vsel %vm1224_vm2, %v1119_v0, -inf  ;;  %1759 = vst.msk [vmem:[%s2599_s10 + $0x3b0] sm:$0xff] %vm1224_vm2, %v1214_v63  ;;  %v1502_v16 = vmax.f32 %v1500_v12, %v1501_v55 }
 0x153   : > { %v1606_v47 = vmax.f32 %v1604_v37, %v1605_v5  ;;  %v1296_v1 = vmax.f32 %v1294_v39, %v1295_v7  ;;  %v1399_v58 = vsel %vm1224_vm2, %v1151_v54, -inf  ;;  %1664 = vst.msk [vmem:[%s2599_s10 + $0xb8] sm:$0xff] %vm1224_vm2, %v1119_v0 }
 0x154   : > { %v1400_v13 = vmax.f32 %v1398_v4, %v1399_v58  ;;  %v973_v14 = vpop.f32.mrf.mxu2  ;;  %v1804_v15 = vpop.permute.xlu0 %1803  ;;  %1696 = vst.msk [vmem:[%s2599_s10 + $0x1b8] sm:$0xff] %vm1224_vm2, %v1151_v54 }
 0x155   : > { %v1297_v51 = vrot.slane %v1296_v1, 4  ;;  %v974_v17 = vadd.f32 %v3048_v27, %v973_v14  ;;  %v1069_v2 = vpop.f32.mrf.mxu3  ;;  %v784_v8 = vpop.f32.mrf.mxu0  ;;  %1902 = vst.msk [vmem:[%s2599_s10 + $0x20] sm:$0xff] %vm1897_vm3, %v1804_v15 }
 0x156   : > { %v1401_v3 = vrot.slane %v1400_v13, 4  ;;  %v1070_v9 = vadd.f32 %v3048_v27, %v1069_v2  ;;  %v3310_v6 = vadd.f32 %v3048_v27, %v784_v8  ;;  %v880_v18 = vpop.f32.mrf.mxu1  ;;  %1903 = vst.msk [vmem:[%s2599_s10 + $0x28] sm:$0xff] %vm1897_vm3, %v1804_v15 }
 0x157   : > { %v1298_v19 = vmax.f32 %v1296_v1, %v1297_v51  ;;  %v1183_v24 = vmax.f32 %v974_v17, 0.0  ;;  %v3315_v25 = vadd.f32 %v3048_v27, %v880_v18  ;;  %1904 = vst.msk [vmem:[%s2599_s10 + $0x30] sm:$0xff] %vm1897_vm3, %v1804_v15 }
 0x158   : > { %v1402_v28 = vmax.f32 %v1400_v13, %v1401_v3  ;;  %v1215_v33 = vmax.f32 %v1070_v9, 0.0  ;;  %v1120_v34 = vmax.f32 %v3310_v6, 0.0  ;;  %1905 = vst.msk [vmem:[%s2599_s10 + $0x38] sm:$0xff] %vm1897_vm3, %v1804_v15 }
 0x159   : > { %v1503_v10 = vsel %vm1224_vm2, %v1183_v24, -inf  ;;  %1728 = vst.msk [vmem:[%s2599_s10 + $0x2b8] sm:$0xff] %vm1224_vm2, %v1183_v24  ;;  %v1152_v22 = vmax.f32 %v3315_v25, 0.0  ;;  %v1299_v11 = vrot.slane %v1298_v19, 2 }
 0x15a   : > { %v1504_v23 = vmax.f32 %v1502_v16, %v1503_v10  ;;  %v1607_v35 = vsel %vm1224_vm2, %v1215_v33, -inf  ;;  %1760 = vst.msk [vmem:[%s2599_s10 + $0x3b8] sm:$0xff] %vm1224_vm2, %v1215_v33  ;;  %v1403_v36 = vrot.slane %v1402_v28, 2  ;;  %v1303_v2 = vsel %vm1224_vm2, %v1120_v34, -inf }
 0x15b   : > { %v3327_v42 = vmax.f32 %v1606_v47, %v1607_v35  ;;  %v1852_v43 = vpop.permute.xlu1 %1851  ;;  %v1300_v26 = vmax.f32 %v1298_v19, %v1299_v11  ;;  %1665 = vst.msk [vmem:[%s2599_s10 + $0xc0] sm:$0xff] %vm1224_vm2, %v1120_v34  ;;  %v1407_v8 = vsel %vm1224_vm2, %v1152_v22, -inf }
 0x15c   : > { %v1505_v44 = vrot.slane %v1504_v23, 4  ;;  %v976_v37 = vpop.f32.mrf.mxu2  ;;  %v1404_v20 = vmax.f32 %v1402_v28, %v1403_v36  ;;  %1697 = vst.msk [vmem:[%s2599_s10 + $0x1c0] sm:$0xff] %vm1224_vm2, %v1152_v22 }
 0x15d   : > { %v3340_v45 = vadd.f32 %v3048_v27, %v976_v37  ;;  %v1072_v21 = vpop.f32.mrf.mxu3  ;;  %v1301_v48 = vrot.slane %v1300_v26, 1  ;;  %1998 = vst.msk [vmem:[%s2599_s10 + $0x320] sm:$0xff] %vm1897_vm3, %v1852_v43  ;;  %v787_v40 = vpop.f32.mrf.mxu0 }
 0x15e   : > { %v1506_v32 = vmax.f32 %v1504_v23, %v1505_v44  ;;  %v3345_v30 = vadd.f32 %v3048_v27, %v1072_v21  ;;  %v883_v31 = vpop.f32.mrf.mxu1  ;;  %v1405_v50 = vrot.slane %v1404_v20, 1  ;;  %1999 = vst.msk [vmem:[%s2599_s10 + $0x328] sm:$0xff] %vm1897_vm3, %v1852_v43  ;;  %v788_v53 = vadd.f32 %v3048_v27, %v787_v40  ;;  %v1820_v57 = vpop.permute.xlu0 %1819 }
 0x15f   : > { %v1184_v52 = vmax.f32 %v3340_v45, 0.0  ;;  %2000 = vst.msk [vmem:[%s2599_s10 + $0x330] sm:$0xff] %vm1897_vm3, %v1852_v43  ;;  %v1302_v59 = vmax.f32 %v1300_v26, %v1301_v48  ;;  %v884_v29 = vadd.f32 %v3048_v27, %v883_v31 }
 0x160   : > { %v1216_v56 = vmax.f32 %v3345_v30, 0.0  ;;  %v1406_v60 = vmax.f32 %v1404_v20, %v1405_v50  ;;  %v1507_v46 = vrot.slane %v1506_v32, 2  ;;  %2001 = vst.msk [vmem:[%s2599_s10 + $0x338] sm:$0xff] %vm1897_vm3, %v1852_v43  ;;  %v1121_v61 = vmax.f32 %v788_v53, 0.0 }
 0x161   : > { %1729 = vst.msk [vmem:[%s2599_s10 + $0x2c0] sm:$0xff] %vm1224_vm2, %v1184_v52  ;;  %1811 = vrot.lane.b32.xlu2 %v1302_v59, %s2364_s11  ;;  %v1153_v0 = vmax.f32 %v884_v29, 0.0  ;;  %v1511_v23 = vsel %vm1224_vm2, %v1184_v52, -inf }
 0x162   : > { %1827 = vrot.lane.b32.xlu1 %v1406_v60, %s2364_s11  ;;  %v1508_v38 = vmax.f32 %v1506_v32, %v1507_v46  ;;  %1761 = vst.msk [vmem:[%s2599_s10 + $0x3c0] sm:$0xff] %vm1224_vm2, %v1216_v56  ;;  %v1304_v14 = vsel %vm1224_vm2, %v1121_v61, -inf }
 0x163   : > { %1934 = vst.msk [vmem:[%s2599_s10 + $0x120] sm:$0xff] %vm1897_vm3, %v1820_v57  ;;  %v1854_v4 = vpop.permute.xlu2 %1853  ;;  %v1408_v15 = vsel %vm1224_vm2, %v1153_v0, -inf  ;;  %v1305_v28 = vmax.f32 %v1303_v2, %v1304_v14 }
 0x164   : > { %v979_v62 = vpop.f32.mrf.mxu2  ;;  %v1509_v63 = vrot.slane %v1508_v38, 1  ;;  %1935 = vst.msk [vmem:[%s2599_s10 + $0x128] sm:$0xff] %vm1897_vm3, %v1820_v57  ;;  %v1409_v33 = vmax.f32 %v1407_v8, %v1408_v15 }
 0x165   : > { %v1075_v49 = vpop.f32.mrf.mxu3  ;;  %1936 = vst.msk [vmem:[%s2599_s10 + $0x130] sm:$0xff] %vm1897_vm3, %v1820_v57  ;;  %v790_v41 = vpop.f32.mrf.mxu0  ;;  %v980_v47 = vadd.f32 %v3048_v27, %v979_v62 }
 0x166   : > { %v886_v39 = vpop.f32.mrf.mxu1  ;;  %v1510_v54 = vmax.f32 %v1508_v38, %v1509_v63  ;;  %1937 = vst.msk [vmem:[%s2599_s10 + $0x138] sm:$0xff] %vm1897_vm3, %v1820_v57  ;;  %v791_v5 = vadd.f32 %v3048_v27, %v790_v41  ;;  %v3384_v1 = vadd.f32 %v3048_v27, %v1075_v49 }
 0x167   : > { %v887_v7 = vadd.f32 %v3048_v27, %v886_v39  ;;  %1666 = vst.msk [vmem:[%s2599_s10 + $0xc8] sm:$0xff] %vm1224_vm2, %v1121_v61  ;;  %v1185_v13 = vmax.f32 %v980_v47, 0.0 }
 0x168   : > { %1843 = vrot.lane.b32.xlu0 %v1510_v54, %s2364_s11  ;;  %1698 = vst.msk [vmem:[%s2599_s10 + $0x1c8] sm:$0xff] %vm1224_vm2, %v1153_v0  ;;  %v1122_v58 = vmax.f32 %v791_v5, 0.0  ;;  %v1217_v55 = vmax.f32 %v3384_v1, 0.0 }
 0x169   : > { %2002 = vst.msk [vmem:[%s2599_s10 + $0x340] sm:$0xff] %vm1897_vm3, %v1854_v4  ;;  %v1154_v12 = vmax.f32 %v887_v7, 0.0  ;;  %v1512_v35 = vsel %vm1224_vm2, %v1185_v13, -inf }
 0x16a   : > { %2003 = vst.msk [vmem:[%s2599_s10 + $0x348] sm:$0xff] %vm1897_vm3, %v1854_v4  ;;  %v1306_v6 = vsel %vm1224_vm2, %v1122_v58, -inf  ;;  %v1513_v45 = vmax.f32 %v1511_v23, %v1512_v35 }
 0x16b   : > { %2004 = vst.msk [vmem:[%s2599_s10 + $0x350] sm:$0xff] %vm1897_vm3, %v1854_v4  ;;  %v1410_v24 = vsel %vm1224_vm2, %v1154_v12, -inf  ;;  %v1307_v36 = vmax.f32 %v1305_v28, %v1306_v6 }
 0x16c   : > { %2005 = vst.msk [vmem:[%s2599_s10 + $0x358] sm:$0xff] %vm1897_vm3, %v1854_v4  ;;  %v1411_v43 = vmax.f32 %v1409_v33, %v1410_v24 }
 0x16d   : > { %v982_v51 = vpop.f32.mrf.mxu2  ;;  %v1078_v17 = vpop.f32.mrf.mxu3  ;;  %1730 = vst.msk [vmem:[%s2599_s10 + $0x2c8] sm:$0xff] %vm1224_vm2, %v1185_v13 }
 0x16e   : > { %v983_v3 = vadd.f32 %v3048_v27, %v982_v51  ;;  %v3407_v9 = vadd.f32 %v3048_v27, %v1078_v17  ;;  %v793_v18 = vpop.f32.mrf.mxu0  ;;  %v889_v19 = vpop.f32.mrf.mxu1  ;;  %1762 = vst.msk [vmem:[%s2599_s10 + $0x3c8] sm:$0xff] %vm1224_vm2, %v1217_v55 }
 0x16f   : > { %v794_v25 = vadd.f32 %v3048_v27, %v793_v18  ;;  %v890_v16 = vadd.f32 %v3048_v27, %v889_v19  ;;  %1667 = vst.msk [vmem:[%s2599_s10 + $0xd0] sm:$0xff] %vm1224_vm2, %v1122_v58 }
 0x170   : > { %v1186_v34 = vmax.f32 %v983_v3, 0.0  ;;  %1699 = vst.msk [vmem:[%s2599_s10 + $0x1d0] sm:$0xff] %vm1224_vm2, %v1154_v12  ;;  %v1218_v10 = vmax.f32 %v3407_v9, 0.0 }
 0x171   : > { %v1123_v22 = vmax.f32 %v794_v25, 0.0  ;;  %v1155_v11 = vmax.f32 %v890_v16, 0.0 }
 0x172   : > { %1731 = vst.msk [vmem:[%s2599_s10 + $0x2d0] sm:$0xff] %vm1224_vm2, %v1186_v34  ;;  %v1514_v21 = vsel %vm1224_vm2, %v1186_v34, -inf  ;;  %v1618_v1 = vsel %vm1224_vm2, %v1218_v10, -inf }
 0x173   : > { %1763 = vst.msk [vmem:[%s2599_s10 + $0x3d0] sm:$0xff] %vm1224_vm2, %v1218_v10  ;;  %v1308_v26 = vsel %vm1224_vm2, %v1123_v22, -inf  ;;  %v1412_v44 = vsel %vm1224_vm2, %v1155_v11, -inf  ;;  %v1806_v53 = vpop.permute.xlu1 %1805  ;;  %v1515_v61 = vmax.f32 %v1513_v45, %v1514_v21 }
 0x174   : > { %v1309_v37 = vmax.f32 %v1307_v36, %v1308_v26  ;;  %1668 = vst.msk [vmem:[%s2599_s10 + $0xd8] sm:$0xff] %vm1224_vm2, %v1123_v22  ;;  %v1413_v20 = vmax.f32 %v1411_v43, %v1412_v44 }
 0x175   : > { %1700 = vst.msk [vmem:[%s2599_s10 + $0x1d8] sm:$0xff] %vm1224_vm2, %v1155_v11  ;;  %v985_v48 = vpop.f32.mrf.mxu2  ;;  %v1081_v32 = vpop.f32.mrf.mxu3 }
 0x176   : > { %v1310_v40 = vrot.slane %v1309_v37, 4  ;;  %v1414_v31 = vrot.slane %v1413_v20, 4  ;;  %v986_v50 = vadd.f32 %v3048_v27, %v985_v48  ;;  %v3441_v52 = vadd.f32 %v3048_v27, %v1081_v32  ;;  %v796_v59 = vpop.f32.mrf.mxu0  ;;  %1906 = vst.msk [vmem:[%s2599_s10 + $0x40] sm:$0xff] %vm1897_vm3, %v1806_v53  ;;  %v892_v46 = vpop.f32.mrf.mxu1  ;;  %v2299_v32 = vld [vmem:[%s3782_s2] ss:$0 sm:$0xff] }
 0x177   : > { %v3446_v60 = vadd.f32 %v3048_v27, %v796_v59  ;;  %1907 = vst.msk [vmem:[%s2599_s10 + $0x48] sm:$0xff] %vm1897_vm3, %v1806_v53  ;;  %v3455_v0 = vadd.f32 %v3048_v27, %v892_v46  ;;  %v1615_v48 = vsel %vm1224_vm2, %v1216_v56, -inf }
 0x178   : > { %v1311_v57 = vmax.f32 %v1309_v37, %v1310_v40  ;;  %v1415_v29 = vmax.f32 %v1413_v20, %v1414_v31  ;;  %v1187_v38 = vmax.f32 %v986_v50, 0.0  ;;  %v1219_v62 = vmax.f32 %v3441_v52, 0.0  ;;  %1908 = vst.msk [vmem:[%s2599_s10 + $0x50] sm:$0xff] %vm1897_vm3, %v1806_v53 }
 0x179   : > { %v1124_v63 = vmax.f32 %v3446_v60, 0.0  ;;  %v1156_v4 = vmax.f32 %v3455_v0, 0.0  ;;  %1909 = vst.msk [vmem:[%s2599_s10 + $0x58] sm:$0xff] %vm1897_vm3, %v1806_v53  ;;  %v1616_v37 = vsel %vm1224_vm2, %v1217_v55, -inf }
 0x17a   : > { %v1516_v49 = vsel %vm1224_vm2, %v1187_v38, -inf  ;;  %1732 = vst.msk [vmem:[%s2599_s10 + $0x2d8] sm:$0xff] %vm1224_vm2, %v1187_v38  ;;  %v1416_v41 = vrot.slane %v1415_v29, 2  ;;  %v1312_v39 = vrot.slane %v1311_v57, 2  ;;  %v1838_v5 = vpop.permute.xlu0 %1837  ;;  %v1617_v40 = vmax.f32 %v1615_v48, %v1616_v37 }
 0x17b   : > { %v1517_v54 = vmax.f32 %v1515_v61, %v1516_v49  ;;  %1764 = vst.msk [vmem:[%s2599_s10 + $0x3d8] sm:$0xff] %vm1224_vm2, %v1219_v62  ;;  %v1620_v30 = vsel %vm1224_vm2, %v1219_v62, -inf  ;;  %v1316_v62 = vsel %vm1224_vm2, %v1124_v63, -inf }
 0x17c   : > { %v1417_v7 = vmax.f32 %v1415_v29, %v1416_v41  ;;  %v1313_v47 = vmax.f32 %v1311_v57, %v1312_v39  ;;  %1669 = vst.msk [vmem:[%s2599_s10 + $0xe0] sm:$0xff] %vm1224_vm2, %v1124_v63  ;;  %v1824_v16 = vpop.permute.xlu2 %1823  ;;  %v1619_v9 = vmax.f32 %v1617_v40, %v1618_v1 }
 0x17d   : > { %v1518_v58 = vrot.slane %v1517_v54, 4  ;;  %v988_v12 = vpop.f32.mrf.mxu2  ;;  %v1084_v13 = vpop.f32.mrf.mxu3  ;;  %1701 = vst.msk [vmem:[%s2599_s10 + $0x1e0] sm:$0xff] %vm1224_vm2, %v1156_v4 }
 0x17e   : > { %v3476_v14 = vadd.f32 %v3048_v27, %v988_v12  ;;  %v3479_v15 = vadd.f32 %v3048_v27, %v1084_v13  ;;  %v799_v51 = vpop.f32.mrf.mxu0  ;;  %v1418_v17 = vrot.slane %v1417_v7, 1  ;;  %v1314_v2 = vrot.slane %v1313_v47, 1  ;;  %1970 = vst.msk [vmem:[%s2599_s10 + $0x240] sm:$0xff] %vm1897_vm3, %v1838_v5  ;;  %v895_v3 = vpop.f32.mrf.mxu1 }
 0x17f   : > { %v1519_v8 = vmax.f32 %v1517_v54, %v1518_v58  ;;  %1971 = vst.msk [vmem:[%s2599_s10 + $0x248] sm:$0xff] %vm1897_vm3, %v1838_v5  ;;  %v800_v33 = vadd.f32 %v3048_v27, %v799_v51  ;;  %v1822_v23 = vpop.permute.xlu1 %1821  ;;  %v896_v35 = vadd.f32 %v3048_v27, %v895_v3  ;;  %v1621_v61 = vmax.f32 %v1619_v9, %v1620_v30 }
 0x180   : > { %v1188_v18 = vmax.f32 %v3476_v14, 0.0  ;;  %v1220_v19 = vmax.f32 %v3479_v15, 0.0  ;;  %v1419_v6 = vmax.f32 %v1417_v7, %v1418_v17  ;;  %1972 = vst.msk [vmem:[%s2599_s10 + $0x250] sm:$0xff] %vm1897_vm3, %v1838_v5  ;;  %v1315_v24 = vmax.f32 %v1313_v47, %v1314_v2 }
 0x181   : > { %v1520_v25 = vrot.slane %v1519_v8, 2  ;;  %1973 = vst.msk [vmem:[%s2599_s10 + $0x258] sm:$0xff] %vm1897_vm3, %v1838_v5  ;;  %v1125_v45 = vmax.f32 %v800_v33, 0.0  ;;  %v1157_v55 = vmax.f32 %v896_v35, 0.0  ;;  %v1420_v54 = vsel %vm1224_vm2, %v1156_v4, -inf }
 0x182   : > { %1829 = vrot.lane.b32.xlu2 %v1419_v6, %s2364_s11  ;;  %1733 = vst.msk [vmem:[%s2599_s10 + $0x2e0] sm:$0xff] %vm1224_vm2, %v1188_v18  ;;  %1813 = vrot.lane.b32.xlu0 %v1315_v24, %s2364_s11  ;;  %v1524_v63 = vsel %vm1224_vm2, %v1188_v18, -inf  ;;  %v1622_v2 = vrot.slane %v1621_v61, 4  ;;  %v1628_v24 = vsel %vm1224_vm2, %v1220_v19, -inf }
 0x183   : > { %v1521_v28 = vmax.f32 %v1519_v8, %v1520_v25  ;;  %1765 = vst.msk [vmem:[%s2599_s10 + $0x3e0] sm:$0xff] %vm1224_vm2, %v1220_v19  ;;  %v1317_v10 = vsel %vm1224_vm2, %v1125_v45, -inf  ;;  %v1421_v46 = vsel %vm1224_vm2, %v1157_v55, -inf }
 0x184   : > { %1942 = vst.msk [vmem:[%s2599_s10 + $0x160] sm:$0xff] %vm1897_vm3, %v1824_v16  ;;  %v1318_v5 = vmax.f32 %v1316_v62, %v1317_v10  ;;  %v1422_v47 = vmax.f32 %v1420_v54, %v1421_v46 }
 0x185   : > { %v991_v34 = vpop.f32.mrf.mxu2  ;;  %v1087_v22 = vpop.f32.mrf.mxu3  ;;  %v1522_v11 = vrot.slane %v1521_v28, 1  ;;  %1943 = vst.msk [vmem:[%s2599_s10 + $0x168] sm:$0xff] %vm1897_vm3, %v1824_v16 }
 0x186   : > { %v802_v36 = vpop.f32.mrf.mxu0  ;;  %1944 = vst.msk [vmem:[%s2599_s10 + $0x170] sm:$0xff] %vm1897_vm3, %v1824_v16  ;;  %v898_v26 = vpop.f32.mrf.mxu1  ;;  %v992_v21 = vadd.f32 %v3048_v27, %v991_v34 }
 0x187   : > { %v803_v43 = vadd.f32 %v3048_v27, %v802_v36  ;;  %v1523_v44 = vmax.f32 %v1521_v28, %v1522_v11  ;;  %1945 = vst.msk [vmem:[%s2599_s10 + $0x178] sm:$0xff] %vm1897_vm3, %v1824_v16  ;;  %v899_v20 = vadd.f32 %v3048_v27, %v898_v26  ;;  %v1088_v27 = vadd.f32 %v2299_v32, %v1087_v22 }
 0x188   : > { %1938 = vst.msk [vmem:[%s2599_s10 + $0x140] sm:$0xff] %vm1897_vm3, %v1822_v23  ;;  %v1189_v50 = vmax.f32 %v992_v21, 0.0 }
 0x189   : > { %1845 = vrot.lane.b32.xlu1 %v1523_v44, %s2364_s11  ;;  %1939 = vst.msk [vmem:[%s2599_s10 + $0x148] sm:$0xff] %vm1897_vm3, %v1822_v23  ;;  %v1126_v31 = vmax.f32 %v803_v43, 0.0  ;;  %v1158_v56 = vmax.f32 %v899_v20, 0.0  ;;  %v1221_v52 = vmax.f32 %v1088_v27, 0.0  ;;  %v1623_v44 = vmax.f32 %v1621_v61, %v1622_v2 }
 0x18a   : > { %1940 = vst.msk [vmem:[%s2599_s10 + $0x150] sm:$0xff] %vm1897_vm3, %v1822_v23  ;;  %v1525_v0 = vsel %vm1224_vm2, %v1189_v50, -inf }
 0x18b   : > { %1941 = vst.msk [vmem:[%s2599_s10 + $0x158] sm:$0xff] %vm1897_vm3, %v1822_v23  ;;  %v1319_v49 = vsel %vm1224_vm2, %v1126_v31, -inf  ;;  %v1423_v7 = vsel %vm1224_vm2, %v1158_v56, -inf  ;;  %v1629_v8 = vsel %vm1224_vm2, %v1221_v52, -inf  ;;  %v1526_v25 = vmax.f32 %v1524_v63, %v1525_v0 }
 0x18c   : > { %1670 = vst.msk [vmem:[%s2599_s10 + $0xe8] sm:$0xff] %vm1224_vm2, %v1125_v45  ;;  %v1320_v4 = vmax.f32 %v1318_v5, %v1319_v49  ;;  %v1424_v17 = vmax.f32 %v1422_v47, %v1423_v7  ;;  %v1630_v35 = vmax.f32 %v1628_v24, %v1629_v8 }
 0x18d   : > { %v994_v53 = vpop.f32.mrf.mxu2  ;;  %v1090_v59 = vpop.f32.mrf.mxu3  ;;  %1702 = vst.msk [vmem:[%s2599_s10 + $0x1e8] sm:$0xff] %vm1224_vm2, %v1157_v55 }
 0x18e   : > { %v995_v57 = vadd.f32 %v2299_v32, %v994_v53  ;;  %v1091_v29 = vadd.f32 %v2299_v32, %v1090_v59  ;;  %v805_v38 = vpop.f32.mrf.mxu0  ;;  %1734 = vst.msk [vmem:[%s2599_s10 + $0x2e8] sm:$0xff] %vm1224_vm2, %v1189_v50  ;;  %v901_v39 = vpop.f32.mrf.mxu1  ;;  %v1624_v53 = vrot.slane %v1623_v44, 2 }
 0x18f   : > { %v806_v41 = vadd.f32 %v2299_v32, %v805_v38  ;;  %1766 = vst.msk [vmem:[%s2599_s10 + $0x3e8] sm:$0xff] %vm1224_vm2, %v1221_v52  ;;  %v902_v60 = vadd.f32 %v2299_v32, %v901_v39 }
 0x190   : > { %1671 = vst.msk [vmem:[%s2599_s10 + $0xf0] sm:$0xff] %vm1224_vm2, %v1126_v31  ;;  %v1190_v58 = vmax.f32 %v995_v57, 0.0  ;;  %v1222_v13 = vmax.f32 %v1091_v29, 0.0 }
 0x191   : > { %v1127_v12 = vmax.f32 %v806_v41, 0.0  ;;  %1703 = vst.msk [vmem:[%s2599_s10 + $0x1f0] sm:$0xff] %vm1224_vm2, %v1158_v56  ;;  %v1159_v51 = vmax.f32 %v902_v60, 0.0  ;;  %v1625_v41 = vmax.f32 %v1623_v44, %v1624_v53 }
 0x192   : > { %1735 = vst.msk [vmem:[%s2599_s10 + $0x2f0] sm:$0xff] %vm1224_vm2, %v1190_v58  ;;  %v1527_v16 = vsel %vm1224_vm2, %v1190_v58, -inf  ;;  %v1631_v22 = vsel %vm1224_vm2, %v1222_v13, -inf }
 0x193   : > { %v1321_v14 = vsel %vm1224_vm2, %v1127_v12, -inf  ;;  %1767 = vst.msk [vmem:[%s2599_s10 + $0x3f0] sm:$0xff] %vm1224_vm2, %v1222_v13  ;;  %v1425_v18 = vsel %vm1224_vm2, %v1159_v51, -inf  ;;  %v1808_v6 = vpop.permute.xlu1 %1807  ;;  %v1528_v37 = vmax.f32 %v1526_v25, %v1527_v16  ;;  %v1632_v20 = vmax.f32 %v1630_v35, %v1631_v22 }
 0x194   : > { %v1322_v3 = vmax.f32 %v1320_v4, %v1321_v14  ;;  %1672 = vst.msk [vmem:[%s2599_s10 + $0xf8] sm:$0xff] %vm1224_vm2, %v1127_v12  ;;  %v1426_v28 = vmax.f32 %v1424_v17, %v1425_v18  ;;  %v1626_v63 = vrot.slane %v1625_v41, 1 }
 0x195   : > { %v997_v33 = vpop.f32.mrf.mxu2  ;;  %v1093_v34 = vpop.f32.mrf.mxu3  ;;  %1704 = vst.msk [vmem:[%s2599_s10 + $0x1f8] sm:$0xff] %vm1224_vm2, %v1159_v51 }
 0x196   : > { %v1323_v11 = vrot.slane %v1322_v3, 4  ;;  %v998_v23 = vadd.f32 %v2299_v32, %v997_v33  ;;  %v1094_v15 = vadd.f32 %v2299_v32, %v1093_v34  ;;  %v1427_v19 = vrot.slane %v1426_v28, 4  ;;  %1910 = vst.msk [vmem:[%s2599_s10 + $0x60] sm:$0xff] %vm1897_vm3, %v1808_v6 }
 0x197   : > { %1911 = vst.msk [vmem:[%s2599_s10 + $0x68] sm:$0xff] %vm1897_vm3, %v1808_v6  ;;  %v1609_v32 = vrot.slane %v3327_v42, 4  ;;  %v1627_v4 = vmax.f32 %v1625_v41, %v1626_v63 }
 0x198   : > { %v1324_v36 = vmax.f32 %v1322_v3, %v1323_v11  ;;  %v1191_v43 = vmax.f32 %v998_v23, 0.0  ;;  %v1223_v26 = vmax.f32 %v1094_v15, 0.0  ;;  %v1428_v45 = vmax.f32 %v1426_v28, %v1427_v19  ;;  %1912 = vst.msk [vmem:[%s2599_s10 + $0x70] sm:$0xff] %vm1897_vm3, %v1808_v6 }
 0x199   : > { %1913 = vst.msk [vmem:[%s2599_s10 + $0x78] sm:$0xff] %vm1897_vm3, %v1808_v6  ;;  %v1610_v46 = vmax.f32 %v3327_v42, %v1609_v32 }
 0x19a   : > { %v1529_v21 = vsel %vm1224_vm2, %v1191_v43, -inf  ;;  %1736 = vst.msk [vmem:[%s2599_s10 + $0x2f8] sm:$0xff] %vm1224_vm2, %v1191_v43  ;;  %v1633_v48 = vsel %vm1224_vm2, %v1223_v26, -inf  ;;  %v1325_v55 = vrot.slane %v1324_v36, 2  ;;  %v1429_v31 = vrot.slane %v1428_v45, 2 }
 0x19b   : > { %v1856_v1 = vpop.permute.xlu0 %1855  ;;  %v1530_v27 = vmax.f32 %v1528_v37, %v1529_v21  ;;  %v1634_v40 = vmax.f32 %v1632_v20, %v1633_v48  ;;  %1768 = vst.msk [vmem:[%s2599_s10 + $0x3f8] sm:$0xff] %vm1224_vm2, %v1223_v26  ;;  %v1810_v30 = vpop.permute.xlu2 %1809  ;;  %v1611_v5 = vrot.slane %v1610_v46, 2 }
 0x19c   : > { %v1326_v56 = vmax.f32 %v1324_v36, %v1325_v55  ;;  %2006 = vst.msk [vmem:[%s2599_s10 + $0x360] sm:$0xff] %vm1897_vm3, %v1856_v1  ;;  %v1430_v50 = vmax.f32 %v1428_v45, %v1429_v31  ;;  %v1840_v42 = vpop.permute.xlu1 %1839 }
 0x19d   : > { %v1531_v9 = vrot.slane %v1530_v27, 4  ;;  %v1635_v10 = vrot.slane %v1634_v40, 4  ;;  %2007 = vst.msk [vmem:[%s2599_s10 + $0x368] sm:$0xff] %vm1897_vm3, %v1856_v1  ;;  %v1612_v12 = vmax.f32 %v1610_v46, %v1611_v5 }
 0x19e   : > { %v1327_v59 = vrot.slane %v1326_v56, 1  ;;  %2008 = vst.msk [vmem:[%s2599_s10 + $0x370] sm:$0xff] %vm1897_vm3, %v1856_v1  ;;  %v1431_v29 = vrot.slane %v1430_v50, 1 }
 0x19f   : > { %v1532_v52 = vmax.f32 %v1530_v27, %v1531_v9  ;;  %v1636_v57 = vmax.f32 %v1634_v40, %v1635_v10  ;;  %2009 = vst.msk [vmem:[%s2599_s10 + $0x378] sm:$0xff] %vm1897_vm3, %v1856_v1  ;;  %v1613_v13 = vrot.slane %v1612_v12, 1 }
 0x1a0   : > { %v1328_v38 = vmax.f32 %v1326_v56, %v1327_v59  ;;  %1914 = vst.msk [vmem:[%s2599_s10 + $0x80] sm:$0xff] %vm1897_vm3, %v1810_v30  ;;  %v1432_v61 = vmax.f32 %v1430_v50, %v1431_v29 }
 0x1a1   : > { %v1533_v62 = vrot.slane %v1532_v52, 2  ;;  %v1637_v49 = vrot.slane %v1636_v57, 2  ;;  %1915 = vst.msk [vmem:[%s2599_s10 + $0x88] sm:$0xff] %vm1897_vm3, %v1810_v30  ;;  %v1614_v51 = vmax.f32 %v1612_v12, %v1613_v13 }
 0x1a2   : > { %1815 = vrot.lane.b32.xlu1 %v1328_v38, %s2364_s11  ;;  %1916 = vst.msk [vmem:[%s2599_s10 + $0x90] sm:$0xff] %vm1897_vm3, %v1810_v30  ;;  %1831 = vrot.lane.b32.xlu0 %v1432_v61, %s2364_s11 }
 0x1a3   : > { %v1534_v39 = vmax.f32 %v1532_v52, %v1533_v62  ;;  %v1638_v54 = vmax.f32 %v1636_v57, %v1637_v49  ;;  %1917 = vst.msk [vmem:[%s2599_s10 + $0x98] sm:$0xff] %vm1897_vm3, %v1810_v30  ;;  %v1842_v47 = vpop.permute.xlu2 %1841 }
 0x1a4   : > { %1974 = vst.msk [vmem:[%s2599_s10 + $0x260] sm:$0xff] %vm1897_vm3, %v1840_v42 }
 0x1a5   : > { %v1535_v7 = vrot.slane %v1534_v39, 1  ;;  %v1639_v60 = vrot.slane %v1638_v54, 1  ;;  %1975 = vst.msk [vmem:[%s2599_s10 + $0x268] sm:$0xff] %vm1897_vm3, %v1840_v42 }
 0x1a6   : > { %1976 = vst.msk [vmem:[%s2599_s10 + $0x270] sm:$0xff] %vm1897_vm3, %v1840_v42 }
 0x1a7   : > { %v1536_v58 = vmax.f32 %v1534_v39, %v1535_v7  ;;  %1977 = vst.msk [vmem:[%s2599_s10 + $0x278] sm:$0xff] %vm1897_vm3, %v1840_v42  ;;  %v1640_v0 = vmax.f32 %v1638_v54, %v1639_v60 }
 0x1a8   : > { %1978 = vst.msk [vmem:[%s2599_s10 + $0x280] sm:$0xff] %vm1897_vm3, %v1842_v47 }
 0x1a9   : > { %1847 = vrot.lane.b32.xlu2 %v1536_v58, %s2364_s11  ;;  %1979 = vst.msk [vmem:[%s2599_s10 + $0x288] sm:$0xff] %vm1897_vm3, %v1842_v47 }
 0x1aa   : > { %1863 = vrot.lane.b32.xlu1 %v1640_v0, %s2364_s11  ;;  %1980 = vst.msk [vmem:[%s2599_s10 + $0x290] sm:$0xff] %vm1897_vm3, %v1842_v47  ;;  %1861 = vrot.lane.b32.xlu0 %v1627_v4, %s2364_s11 }
 0x1ab   : > { %1981 = vst.msk [vmem:[%s2599_s10 + $0x298] sm:$0xff] %vm1897_vm3, %v1842_v47 }
 0x1b1   : > { %1859 = vrot.lane.b32.xlu2 %v1614_v51, %s2364_s11 }
 0x1b4   : > { %v1826_v17 = vpop.permute.xlu0 %1825 }
 0x1b5   : > { %1946 = vst.msk [vmem:[%s2599_s10 + $0x180] sm:$0xff] %vm1897_vm3, %v1826_v17 }
 0x1b6   : > { %1947 = vst.msk [vmem:[%s2599_s10 + $0x188] sm:$0xff] %vm1897_vm3, %v1826_v17 }
 0x1b7   : > { %1948 = vst.msk [vmem:[%s2599_s10 + $0x190] sm:$0xff] %vm1897_vm3, %v1826_v17 }
 0x1b8   : > { %1949 = vst.msk [vmem:[%s2599_s10 + $0x198] sm:$0xff] %vm1897_vm3, %v1826_v17 }
 0x1bb   : > { %v1858_v14 = vpop.permute.xlu1 %1857  ;;  %v1812_v2 = vpop.permute.xlu2 %1811 }
 0x1bc   : > { %2010 = vst.msk [vmem:[%s2599_s10 + $0x380] sm:$0xff] %vm1897_vm3, %v1858_v14 }
 0x1bd   : > { %2011 = vst.msk [vmem:[%s2599_s10 + $0x388] sm:$0xff] %vm1897_vm3, %v1858_v14 }
 0x1be   : > { %2012 = vst.msk [vmem:[%s2599_s10 + $0x390] sm:$0xff] %vm1897_vm3, %v1858_v14 }
 0x1bf   : > { %2013 = vst.msk [vmem:[%s2599_s10 + $0x398] sm:$0xff] %vm1897_vm3, %v1858_v14 }
 0x1c0   : > { %1918 = vst.msk [vmem:[%s2599_s10 + $0xa0] sm:$0xff] %vm1897_vm3, %v1812_v2 }
 0x1c1   : > { %1919 = vst.msk [vmem:[%s2599_s10 + $0xa8] sm:$0xff] %vm1897_vm3, %v1812_v2 }
 0x1c2   : > { %1920 = vst.msk [vmem:[%s2599_s10 + $0xb0] sm:$0xff] %vm1897_vm3, %v1812_v2 }
 0x1c3   : > { %1921 = vst.msk [vmem:[%s2599_s10 + $0xb8] sm:$0xff] %vm1897_vm3, %v1812_v2 }
 0x1d4   : > { %v1828_v8 = vpop.permute.xlu1 %1827 }
 0x1d5   : > { %1950 = vst.msk [vmem:[%s2599_s10 + $0x1a0] sm:$0xff] %vm1897_vm3, %v1828_v8 }
 0x1d6   : > { %1951 = vst.msk [vmem:[%s2599_s10 + $0x1a8] sm:$0xff] %vm1897_vm3, %v1828_v8 }
 0x1d7   : > { %1952 = vst.msk [vmem:[%s2599_s10 + $0x1b0] sm:$0xff] %vm1897_vm3, %v1828_v8 }
 0x1d8   : > { %1953 = vst.msk [vmem:[%s2599_s10 + $0x1b8] sm:$0xff] %vm1897_vm3, %v1828_v8 }
 0x1da   : > { %v1844_v3 = vpop.permute.xlu0 %1843 }
 0x1db   : > { %1982 = vst.msk [vmem:[%s2599_s10 + $0x2a0] sm:$0xff] %vm1897_vm3, %v1844_v3 }
 0x1dc   : > { %1983 = vst.msk [vmem:[%s2599_s10 + $0x2a8] sm:$0xff] %vm1897_vm3, %v1844_v3  ;;  %v1830_v18 = vpop.permute.xlu2 %1829 }
 0x1dd   : > { %1984 = vst.msk [vmem:[%s2599_s10 + $0x2b0] sm:$0xff] %vm1897_vm3, %v1844_v3 }
 0x1de   : > { %1985 = vst.msk [vmem:[%s2599_s10 + $0x2b8] sm:$0xff] %vm1897_vm3, %v1844_v3 }
 0x1df   : > { %1954 = vst.msk [vmem:[%s2599_s10 + $0x1c0] sm:$0xff] %vm1897_vm3, %v1830_v18 }
 0x1e0   : > { %1955 = vst.msk [vmem:[%s2599_s10 + $0x1c8] sm:$0xff] %vm1897_vm3, %v1830_v18 }
 0x1e1   : > { %1956 = vst.msk [vmem:[%s2599_s10 + $0x1d0] sm:$0xff] %vm1897_vm3, %v1830_v18 }
 0x1e2   : > { %1957 = vst.msk [vmem:[%s2599_s10 + $0x1d8] sm:$0xff] %vm1897_vm3, %v1830_v18 }
 0x1f4   : > { %v1814_v6 = vpop.permute.xlu0 %1813 }
 0x1f5   : > { %1922 = vst.msk [vmem:[%s2599_s10 + $0xc0] sm:$0xff] %vm1897_vm3, %v1814_v6 }
 0x1f6   : > { %1923 = vst.msk [vmem:[%s2599_s10 + $0xc8] sm:$0xff] %vm1897_vm3, %v1814_v6 }
 0x1f7   : > { %1924 = vst.msk [vmem:[%s2599_s10 + $0xd0] sm:$0xff] %vm1897_vm3, %v1814_v6 }
 0x1f8   : > { %1925 = vst.msk [vmem:[%s2599_s10 + $0xd8] sm:$0xff] %vm1897_vm3, %v1814_v6 }
 0x1fb   : > { %v1846_v24 = vpop.permute.xlu1 %1845 }
 0x1fc   : > { %1986 = vst.msk [vmem:[%s2599_s10 + $0x2c0] sm:$0xff] %vm1897_vm3, %v1846_v24 }
 0x1fd   : > { %1987 = vst.msk [vmem:[%s2599_s10 + $0x2c8] sm:$0xff] %vm1897_vm3, %v1846_v24 }
 0x1fe   : > { %1988 = vst.msk [vmem:[%s2599_s10 + $0x2d0] sm:$0xff] %vm1897_vm3, %v1846_v24 }
 0x1ff   : > { %1989 = vst.msk [vmem:[%s2599_s10 + $0x2d8] sm:$0xff] %vm1897_vm3, %v1846_v24 }
 0x203   : > { %v1848_v25 = vpop.permute.xlu2 %1847 }
 0x204   : > { %1990 = vst.msk [vmem:[%s2599_s10 + $0x2e0] sm:$0xff] %vm1897_vm3, %v1848_v25 }
 0x205   : > { %1991 = vst.msk [vmem:[%s2599_s10 + $0x2e8] sm:$0xff] %vm1897_vm3, %v1848_v25 }
 0x206   : > { %1992 = vst.msk [vmem:[%s2599_s10 + $0x2f0] sm:$0xff] %vm1897_vm3, %v1848_v25 }
 0x207   : > { %1993 = vst.msk [vmem:[%s2599_s10 + $0x2f8] sm:$0xff] %vm1897_vm3, %v1848_v25 }
 0x20b   : > { %v1860_v16 = vpop.permute.xlu2 %1859 }
 0x20c   : > { %2014 = vst.msk [vmem:[%s2599_s10 + $0x3a0] sm:$0xff] %vm1897_vm3, %v1860_v16 }
 0x20d   : > { %2015 = vst.msk [vmem:[%s2599_s10 + $0x3a8] sm:$0xff] %vm1897_vm3, %v1860_v16 }
 0x20e   : > { %2016 = vst.msk [vmem:[%s2599_s10 + $0x3b0] sm:$0xff] %vm1897_vm3, %v1860_v16 }
 0x20f   : > { %2017 = vst.msk [vmem:[%s2599_s10 + $0x3b8] sm:$0xff] %vm1897_vm3, %v1860_v16 }
 0x214   : > { %v1816_v28 = vpop.permute.xlu1 %1815  ;;  %v1832_v33 = vpop.permute.xlu0 %1831 }
 0x215   : > { %1926 = vst.msk [vmem:[%s2599_s10 + $0xe0] sm:$0xff] %vm1897_vm3, %v1816_v28 }
 0x216   : > { %1927 = vst.msk [vmem:[%s2599_s10 + $0xe8] sm:$0xff] %vm1897_vm3, %v1816_v28 }
 0x217   : > { %1928 = vst.msk [vmem:[%s2599_s10 + $0xf0] sm:$0xff] %vm1897_vm3, %v1816_v28 }
 0x218   : > { %1929 = vst.msk [vmem:[%s2599_s10 + $0xf8] sm:$0xff] %vm1897_vm3, %v1816_v28 }
 0x219   : > { %1958 = vst.msk [vmem:[%s2599_s10 + $0x1e0] sm:$0xff] %vm1897_vm3, %v1832_v33 }
 0x21a   : > { %1959 = vst.msk [vmem:[%s2599_s10 + $0x1e8] sm:$0xff] %vm1897_vm3, %v1832_v33 }
 0x21b   : > { %1960 = vst.msk [vmem:[%s2599_s10 + $0x1f0] sm:$0xff] %vm1897_vm3, %v1832_v33 }
 0x21c   : > { %1961 = vst.msk [vmem:[%s2599_s10 + $0x1f8] sm:$0xff] %vm1897_vm3, %v1832_v33  ;;  %v1864_v34 = vpop.permute.xlu1 %1863  ;;  %v1862_v22 = vpop.permute.xlu0 %1861 }
 0x21d   : > { %2022 = vst.msk [vmem:[%s2599_s10 + $0x3e0] sm:$0xff] %vm1897_vm3, %v1864_v34 }
 0x21e   : > { %2023 = vst.msk [vmem:[%s2599_s10 + $0x3e8] sm:$0xff] %vm1897_vm3, %v1864_v34 }
 0x21f   : > { %2024 = vst.msk [vmem:[%s2599_s10 + $0x3f0] sm:$0xff] %vm1897_vm3, %v1864_v34 }
 0x220   : > { %2025 = vst.msk [vmem:[%s2599_s10 + $0x3f8] sm:$0xff] %vm1897_vm3, %v1864_v34 }
 0x221   : > { %2018 = vst.msk [vmem:[%s2599_s10 + $0x3c0] sm:$0xff] %vm1897_vm3, %v1862_v22 }
 0x222   : > { %2019 = vst.msk [vmem:[%s2599_s10 + $0x3c8] sm:$0xff] %vm1897_vm3, %v1862_v22 }
 0x223   : > { %2020 = vst.msk [vmem:[%s2599_s10 + $0x3d0] sm:$0xff] %vm1897_vm3, %v1862_v22 }
 0x224   : > { %2021 = vst.msk [vmem:[%s2599_s10 + $0x3d8] sm:$0xff] %vm1897_vm3, %v1862_v22 }
 0x225   : > { %2327 = shalt.err (!%p2324_p3)
}
 0x226   : > { %s2365_s6 = smov 128   ;;  %s2366_s10 = smov 8  }
 0x227   : > { %2255 = dma.vmem_to_hbm [thread:$0]  (%p2425_p5), %s2041_s16, 16384, %s2043_s29, %s2027_s30, %s2365_s6, %s2365_s6, %s2366_s10  }
 0x228 PF: > { %p2261_p4 = scmp.ge.s32.totalorder %s2362_s15, 2  ;;  %s2057_s19 = sand.u32 1, %s2350_s12  }
 0x229   : > { %s2058_s20 = scalar_lea.sflag [#allocation3], %s2057_s19 }
 0x22a   : > { %p2258_p7 = pnand %p2261_p4, %p2429_p6 }
 0x22c   : > { %p2259_p8 = pneg %p2258_p7 }
 0x22e   : > { %2345 = dma.done.wait (%p2259_p8), %s2058_s20, 16384  }
 0x22f   : > { %2347 = vsyncadd (%p2259_p8), %s2058_s20, 4294950912  ;;  %p13_p9 = scmp.ge.s32.totalorder %s2412_s18, 4   ;;  %s3786_s12 = smov %s2354_s13 }
 0x230   : > { %s3787_s13 = smov %s2358_s14  ;;  %s3788_s14 = smov %s2423_s21 }
 0x231   : > { %s3789_s15 = smov %s2412_s18  ;;  %15 = sbr.rel (!%p13_p9) target bundleno = 3 (0x3), region = 67 }
 0x236   :  { %2064 = vsyncpa [#allocation3], 1 }
 0x237   :  { %2066 = vsyncpa [#allocation3 + $0x1], 1 }

</bundles_post_ra>
